<compile_context>
chip_gen: v5e
topology: v5e:2x2
jax: 0.10.0
libtpu: 0.0.40
codegen_flags: <defaults>
</compile_context>

<pallas_src>
import functools

import jax
import jax.numpy as jnp
from jax.experimental import pallas as pl
from jax.experimental.pallas import tpu as pltpu


_VMEM_LIMIT = 32 * 1024 * 1024     # explicit scoped-VMEM limit, safe on v5e/v6e/v7x
_TILE_BUDGET = 2 * 1024 * 1024     # per-tile byte budget (double-buffered) for row tiling
_DECONV_TM = 1024                  # row-tile for the transposed conv


def _pick_row_tile(h, w, cin_total, cout):
    """Largest divisor of h whose (double-buffered) tile set fits the budget."""
    best = 1
    for th in range(1, h + 1):
        if h % th:
            continue
        in_bytes = (th + 2) * (w + 2) * cin_total * 2   # bf16 input tile
        out_bytes = th * w * cout * 4                   # (<= f32) output tile
        if 2 * (in_bytes + out_bytes) <= _TILE_BUDGET:
            best = th
    return best


# ----------------------------------------------------------------------------
# Pallas kernels
# ----------------------------------------------------------------------------
def _conv3x3_kernel(*args, n_inputs, activation, th, w_img):
    # inputs:  n_inputs haloed row tiles (th+2, w_img+2, Cin_i) in bf16
    #          n_inputs weights (9*Cin_i, Cout) in bf16
    #          bias (1, Cout) f32
    # output:  (th, w_img, Cout)
    x_refs = args[:n_inputs]
    w_refs = args[n_inputs:2 * n_inputs]
    b_ref = args[2 * n_inputs]
    o_ref = args[2 * n_inputs + 1]
    cout = o_ref.shape[-1]
    rows = th * w_img

    acc = jnp.zeros((rows, cout), jnp.float32)
    for x_ref, w_ref in zip(x_refs, w_refs):
        xt = x_ref[...]                                   # (th+2, w+2, cin)
        cin = xt.shape[-1]
        taps = [xt[dy:dy + th, dx:dx + w_img, :]
                for dy in range(3) for dx in range(3)]
        patch = jnp.concatenate(taps, axis=-1)            # (th, w, 9*cin)
        patch = patch.reshape(rows, 9 * cin)              # im2col in VMEM
        acc = acc + jnp.dot(patch, w_ref[...],
                            preferred_element_type=jnp.float32)

    acc = acc + b_ref[...]
    if activation == "relu":
        acc = jnp.maximum(acc, 0.0)
    elif activation == "sigmoid":
        acc = 1.0 / (1.0 + jnp.exp(-acc))                 # exact, stays in [0, 1]
    o_ref[...] = acc.reshape(th, w_img, cout).astype(o_ref.dtype)


def _deconv2x2_kernel(x_ref, w_ref, b_ref, o_ref):
    # one lane-dense matmul: (TM, Cin) x (Cin, 4*Cout) -> (TM, 4*Cout)
    acc = jnp.dot(x_ref[...], w_ref[...], preferred_element_type=jnp.float32)
    o_ref[...] = (acc + b_ref[...]).astype(o_ref.dtype)


# ----------------------------------------------------------------------------
# Pallas-backed layer wrappers (NHWC)
# ----------------------------------------------------------------------------
def conv3x3(xs, ws, b, activation="relu", out_dtype=jnp.bfloat16):
    """3x3 conv (padding=1, stride=1).  `xs`/`ws` may be tuples for a fused
    skip-concat conv (accumulate one matmul per operand inside one kernel)."""
    if not isinstance(xs, (list, tuple)):
        xs, ws = (xs,), (ws,)
    n_in = len(xs)
    N, H, W, _ = xs[0].shape
    Cout = ws[0].shape[-1]
    cin_total = sum(int(x.shape[-1]) for x in xs)

    TH = _pick_row_tile(H, W, cin_total, Cout)
    nT = H // TH

    tiled = []
    for x in xs:
        xp = jnp.pad(x.astype(jnp.bfloat16), ((0, 0), (1, 1), (1, 1), (0, 0)))
        if nT == 1:
            xt = xp[:, None]
        else:  # duplicate only the 2-row halos, not the 9x im2col stack
            xt = jnp.stack([xp[:, t * TH: t * TH + TH + 2] for t in range(nT)],
                           axis=1)
        tiled.append(xt)                                   # (N, nT, TH+2, W+2, Cin)

    w_flat = [w.reshape(9 * w.shape[2], Cout).astype(jnp.bfloat16) for w in ws]
    b2 = b.reshape(1, Cout).astype(jnp.float32)

    in_specs = []
    for x in tiled:
        cin = int(x.shape[-1])
        in_specs.append(pl.BlockSpec((None, None, TH + 2, W + 2, cin),
                                     lambda n, t: (n, t, 0, 0, 0)))
    for wf in w_flat:
        in_specs.append(pl.BlockSpec(wf.shape, lambda n, t: (0, 0)))
    in_specs.append(pl.BlockSpec((1, Cout), lambda n, t: (0, 0)))

    kernel = functools.partial(_conv3x3_kernel, n_inputs=n_in,
                               activation=activation, th=TH, w_img=W)
    out = pl.pallas_call(
        kernel,
        out_shape=jax.ShapeDtypeStruct((N, nT, TH, W, Cout), out_dtype),
        grid=(N, nT),
        in_specs=in_specs,
        out_specs=pl.BlockSpec((None, None, TH, W, Cout),
                               lambda n, t: (n, t, 0, 0, 0)),
        compiler_params=pltpu.CompilerParams(
            dimension_semantics=("parallel", "parallel"),
            vmem_limit_bytes=_VMEM_LIMIT),
    )(*tiled, *w_flat, b2)
    return out.reshape(N, H, W, Cout)


def conv_transpose2x2(x, w, b, out_dtype=jnp.bfloat16):
    """ConvTranspose2d(kernel=2, stride=2).  x: (N,H,W,Cin), w: (2,2,Cin,Cout)."""
    N, H, W, Cin = x.shape
    Cout = w.shape[-1]
    M = N * H * W
    xf = x.astype(jnp.bfloat16).reshape(M, Cin)
    wf = jnp.transpose(w, (2, 0, 1, 3)).reshape(Cin, 4 * Cout).astype(jnp.bfloat16)
    b4 = jnp.tile(b, 4).reshape(1, 4 * Cout).astype(jnp.float32)

    TM = M if M <= _DECONV_TM else _DECONV_TM
    out = pl.pallas_call(
        _deconv2x2_kernel,
        out_shape=jax.ShapeDtypeStruct((M, 4 * Cout), out_dtype),
        grid=(pl.cdiv(M, TM),),
        in_specs=[pl.BlockSpec((TM, Cin), lambda i: (i, 0)),
                  pl.BlockSpec((Cin, 4 * Cout), lambda i: (0, 0)),
                  pl.BlockSpec((1, 4 * Cout), lambda i: (0, 0))],
        out_specs=pl.BlockSpec((TM, 4 * Cout), lambda i: (i, 0)),
        compiler_params=pltpu.CompilerParams(
            dimension_semantics=("parallel",),
            vmem_limit_bytes=_VMEM_LIMIT),
    )(xf, wf, b4)

    # column t*Cout + co of row (n,h,w) feeds output pixel (2h+dy, 2w+dx), t=dy*2+dx
    y = out.reshape(N, H, W, 2, 2, Cout)
    y = jnp.transpose(y, (0, 1, 3, 2, 4, 5)).reshape(N, 2 * H, 2 * W, Cout)
    return y


def maxpool2x2(x):
    # Plain-JAX 2x2 max per the perf review (trivial VPU work; the Pallas
    # strided-view version only added HBM traffic).
    # TODO(synk): fuse the pool into the preceding conv kernel epilogue as a
    # second output to save one activation read per encoder level.
    N, H, W, C = x.shape
    return x.reshape(N, H // 2, 2, W // 2, 2, C).max(axis=(2, 4))


# ----------------------------------------------------------------------------
# Parameter init (deterministic, synthetic) and forward pass
# ----------------------------------------------------------------------------
def _init_conv(key, kh, kw, cin, cout):
    wkey, bkey = jax.random.split(key)
    bound = 1.0 / float(jnp.sqrt(cin * kh * kw))
    w = jax.random.uniform(wkey, (kh, kw, cin, cout), jnp.float32, -bound, bound)
    b = jax.random.uniform(bkey, (cout,), jnp.float32, -bound, bound)
    return w, b


def init_params(key, filters, input_channels=1, output_channels=1):
    assert len(filters) == 5
    f = filters
    keys = iter(jax.random.split(key, 23))
    p = {}
    p["conv1_1"] = _init_conv(next(keys), 3, 3, input_channels, f[0])
    p["conv1_2"] = _init_conv(next(keys), 3, 3, f[0], f[0])
    p["conv2_1"] = _init_conv(next(keys), 3, 3, f[0], f[1])
    p["conv2_2"] = _init_conv(next(keys), 3, 3, f[1], f[1])
    p["conv3_1"] = _init_conv(next(keys), 3, 3, f[1], f[2])
    p["conv3_2"] = _init_conv(next(keys), 3, 3, f[2], f[2])
    p["conv4_1"] = _init_conv(next(keys), 3, 3, f[2], f[3])
    p["conv4_2"] = _init_conv(next(keys), 3, 3, f[3], f[3])
    p["conv5_1"] = _init_conv(next(keys), 3, 3, f[3], f[4])
    p["conv5_2"] = _init_conv(next(keys), 3, 3, f[4], f[4])
    p["conv5_t"] = _init_conv(next(keys), 2, 2, f[4], f[3])
    p["conv6_1"] = _init_conv(next(keys), 3, 3, f[4], f[3])
    p["conv6_2"] = _init_conv(next(keys), 3, 3, f[3], f[3])
    p["conv6_t"] = _init_conv(next(keys), 2, 2, f[3], f[2])
    p["conv7_1"] = _init_conv(next(keys), 3, 3, f[3], f[2])
    p["conv7_2"] = _init_conv(next(keys), 3, 3, f[2], f[2])
    p["conv7_t"] = _init_conv(next(keys), 2, 2, f[2], f[1])
    p["conv8_1"] = _init_conv(next(keys), 3, 3, f[2], f[1])
    p["conv8_2"] = _init_conv(next(keys), 3, 3, f[1], f[1])
    p["conv8_t"] = _init_conv(next(keys), 2, 2, f[1], f[0])
    p["conv9_1"] = _init_conv(next(keys), 3, 3, f[1], f[0])
    p["conv9_2"] = _init_conv(next(keys), 3, 3, f[0], f[0])
    p["conv10"] = _init_conv(next(keys), 3, 3, f[0], output_channels)
    return p


def dynamic_unet_forward(x_nchw, params):
    p = params
    _, _, H, W = x_nchw.shape
    assert H % 16 == 0 and W % 16 == 0, "spatial dims must be divisible by 16 (4 pool levels)"
    x = jnp.transpose(x_nchw, (0, 2, 3, 1))               # -> NHWC

    # TODO(synk): fuse each convX_1 + convX_2 pair into one kernel with the
    # intermediate held in VMEM (needs a 2-row/2-col halo); kept separate here.
    c1 = conv3x3(x, *p["conv1_1"]); c1 = conv3x3(c1, *p["conv1_2"])
    pool1 = maxpool2x2(c1)
    c2 = conv3x3(pool1, *p["conv2_1"]); c2 = conv3x3(c2, *p["conv2_2"])
    pool2 = maxpool2x2(c2)
    c3 = conv3x3(pool2, *p["conv3_1"]); c3 = conv3x3(c3, *p["conv3_2"])
    pool3 = maxpool2x2(c3)
    c4 = conv3x3(pool3, *p["conv4_1"]); c4 = conv3x3(c4, *p["conv4_2"])
    pool4 = maxpool2x2(c4)
    c5 = conv3x3(pool4, *p["conv5_1"]); c5 = conv3x3(c5, *p["conv5_2"])

    def decoder(prev, skip, tname, c1name, c2name):
        up = conv_transpose2x2(prev, *p[tname])
        w1, b1 = p[c1name]
        cu = up.shape[-1]
        # fused skip-concat: split the weight, accumulate two matmuls in-kernel
        c = conv3x3((up, skip), (w1[:, :, :cu, :], w1[:, :, cu:, :]), b1)
        return conv3x3(c, *p[c2name])

    c6 = decoder(c5, c4, "conv5_t", "conv6_1", "conv6_2")
    c7 = decoder(c6, c3, "conv6_t", "conv7_1", "conv7_2")
    c8 = decoder(c7, c2, "conv7_t", "conv8_1", "conv8_2")
    c9 = decoder(c8, c1, "conv8_t", "conv9_1", "conv9_2")

    out = conv3x3(c9, *p["conv10"], activation="sigmoid", out_dtype=jnp.float32)
    return jnp.transpose(out, (0, 3, 1, 2))               # -> NCHW


# ----------------------------------------------------------------------------
if __name__ == "__main__":
    key = jax.random.PRNGKey(0)
    filters = [4, 8, 16, 32, 64]      # each level doubles (required by UNet skip math)
    in_ch, out_ch = 1, 1

    params = init_params(key, filters, in_ch, out_ch)
    x = jax.random.normal(jax.random.fold_in(key, 999), (2, in_ch, 16, 16),
                          jnp.float32)

    fwd = jax.jit(dynamic_unet_forward)
    y = fwd(x, params)
    y = jax.block_until_ready(y)

    assert y.shape == (2, out_ch, 16, 16), y.shape
    assert bool(jnp.all(jnp.isfinite(y)))
    assert bool(jnp.all((y >= 0.0) & (y <= 1.0)))   # sigmoid output range
    print("KERNEL_OK")
</pallas_src>

<mosaic_0001>
module attributes {stable_mosaic.version = 11 : i64} {
  func.func @_conv3x3_kernel(%arg0: i32, %arg1: i32, %arg2: memref<1x1x18x18x1xbf16, #tpu.memory_space<vmem>>, %arg3: memref<9x4xbf16, #tpu.memory_space<vmem>>, %arg4: memref<1x4xf32, #tpu.memory_space<vmem>>, %arg5: memref<1x1x16x16x4xbf16, #tpu.memory_space<vmem>>) attributes {dimension_semantics = [#tpu.dimension_semantics<parallel>, #tpu.dimension_semantics<parallel>], iteration_bounds = array<i64: 2, 1>, scalar_prefetch = 0 : i64, scratch_operands = 0 : i64, tpu.core_type = #tpu.core_type<tc>, window_params = [{transform_indices = @transform_0, window_bounds = array<i64: 1, 1, 18, 18, 1>}, {pipeline_mode = #tpu.pipeline_mode<synchronous>, transform_indices = @transform_1, window_bounds = array<i64: 9, 4>}, {pipeline_mode = #tpu.pipeline_mode<synchronous>, transform_indices = @transform_2, window_bounds = array<i64: 1, 4>}, {transform_indices = @transform_3, window_bounds = array<i64: 1, 1, 16, 16, 4>}]} {
    %cst = arith.constant 0.000000e+00 : f32
    %0 = vector.broadcast %cst : f32 to vector<256x4xf32>
    %c0 = arith.constant 0 : index
    %c0_0 = arith.constant 0 : index
    %c0_1 = arith.constant 0 : index
    %c0_2 = arith.constant 0 : index
    %c0_3 = arith.constant 0 : index
    %1 = vector.load %arg2[%c0, %c0_0, %c0_1, %c0_2, %c0_3] : memref<1x1x18x18x1xbf16, #tpu.memory_space<vmem>>, vector<1x1x18x18x1xbf16>
    %2 = vector.shape_cast %1 : vector<1x1x18x18x1xbf16> to vector<18x18x1xbf16>
    %3 = vector.extract_strided_slice %2 {offsets = [0, 0, 0], sizes = [16, 16, 1], strides = [1, 1, 1]} : vector<18x18x1xbf16> to vector<16x16x1xbf16>
    %4 = vector.extract_strided_slice %2 {offsets = [0, 1, 0], sizes = [16, 16, 1], strides = [1, 1, 1]} : vector<18x18x1xbf16> to vector<16x16x1xbf16>
    %5 = vector.extract_strided_slice %2 {offsets = [0, 2, 0], sizes = [16, 16, 1], strides = [1, 1, 1]} : vector<18x18x1xbf16> to vector<16x16x1xbf16>
    %6 = vector.extract_strided_slice %2 {offsets = [1, 0, 0], sizes = [16, 16, 1], strides = [1, 1, 1]} : vector<18x18x1xbf16> to vector<16x16x1xbf16>
    %7 = vector.extract_strided_slice %2 {offsets = [1, 1, 0], sizes = [16, 16, 1], strides = [1, 1, 1]} : vector<18x18x1xbf16> to vector<16x16x1xbf16>
    %8 = vector.extract_strided_slice %2 {offsets = [1, 2, 0], sizes = [16, 16, 1], strides = [1, 1, 1]} : vector<18x18x1xbf16> to vector<16x16x1xbf16>
    %9 = vector.extract_strided_slice %2 {offsets = [2, 0, 0], sizes = [16, 16, 1], strides = [1, 1, 1]} : vector<18x18x1xbf16> to vector<16x16x1xbf16>
    %10 = vector.extract_strided_slice %2 {offsets = [2, 1, 0], sizes = [16, 16, 1], strides = [1, 1, 1]} : vector<18x18x1xbf16> to vector<16x16x1xbf16>
    %11 = vector.extract_strided_slice %2 {offsets = [2, 2, 0], sizes = [16, 16, 1], strides = [1, 1, 1]} : vector<18x18x1xbf16> to vector<16x16x1xbf16>
    %12 = tpu.concatenate %3, %4, %5, %6, %7, %8, %9, %10, %11 in 2 : vector<16x16x1xbf16>, vector<16x16x1xbf16>, vector<16x16x1xbf16>, vector<16x16x1xbf16>, vector<16x16x1xbf16>, vector<16x16x1xbf16>, vector<16x16x1xbf16>, vector<16x16x1xbf16>, vector<16x16x1xbf16> -> vector<16x16x9xbf16>
    %13 = vector.shape_cast %12 : vector<16x16x9xbf16> to vector<256x9xbf16>
    %c0_4 = arith.constant 0 : index
    %c0_5 = arith.constant 0 : index
    %14 = vector.load %arg3[%c0_4, %c0_5] : memref<9x4xbf16, #tpu.memory_space<vmem>>, vector<9x4xbf16>
    %cst_6 = arith.constant dense<0.000000e+00> : vector<256x4xf32>
    %15 = tpu.matmul %13, %14, %cst_6 {dimension_numbers = #tpu.dot_dimension_numbers<[1], [0], [0], [1], [0, 0, 1, 1], [], []>} : vector<256x9xbf16>, vector<9x4xbf16>, vector<256x4xf32> -> vector<256x4xf32>
    %16 = arith.addf %0, %15 : vector<256x4xf32>
    %c0_7 = arith.constant 0 : index
    %c0_8 = arith.constant 0 : index
    %17 = vector.load %arg4[%c0_7, %c0_8] : memref<1x4xf32, #tpu.memory_space<vmem>>, vector<1x4xf32>
    %18 = vector.broadcast %17 : vector<1x4xf32> to vector<256x4xf32>
    %19 = arith.addf %16, %18 : vector<256x4xf32>
    %cst_9 = arith.constant 0.000000e+00 : f32
    %20 = vector.broadcast %cst_9 : f32 to vector<256x4xf32>
    %21 = arith.maximumf %19, %20 : vector<256x4xf32>
    %22 = vector.shape_cast %21 : vector<256x4xf32> to vector<16x16x4xf32>
    %23 = arith.truncf %22 : vector<16x16x4xf32> to vector<16x16x4xbf16>
    %c0_10 = arith.constant 0 : index
    %c0_11 = arith.constant 0 : index
    %c0_12 = arith.constant 0 : index
    %c0_13 = arith.constant 0 : index
    %c0_14 = arith.constant 0 : index
    %24 = vector.load %arg5[%c0_10, %c0_11, %c0_12, %c0_13, %c0_14] : memref<1x1x16x16x4xbf16, #tpu.memory_space<vmem>>, vector<1x1x16x16x4xbf16>
    %25 = vector.shape_cast %24 : vector<1x1x16x16x4xbf16> to vector<16x16x4xbf16>
    %26 = vector.shape_cast %23 : vector<16x16x4xbf16> to vector<1x1x16x16x4xbf16>
    tpu.vector_store %arg5[%c0_10, %c0_11, %c0_12, %c0_13, %c0_14], %26 {strides = array<i32>} : memref<1x1x16x16x4xbf16, #tpu.memory_space<vmem>>, vector<1x1x16x16x4xbf16>,
    return
  }
  func.func @transform_0(%arg0: i32, %arg1: i32) -> (i32, i32, i32, i32, i32) {
    %c0_i32 = arith.constant 0 : i32
    %c0_i32_0 = arith.constant 0 : i32
    %c0_i32_1 = arith.constant 0 : i32
    %c0_i32_2 = arith.constant 0 : i32
    return %arg0, %arg1, %c0_i32, %c0_i32_0, %c0_i32_1 : i32, i32, i32, i32, i32
  }
  func.func @transform_1(%arg0: i32, %arg1: i32) -> (i32, i32) {
    %c0_i32 = arith.constant 0 : i32
    %c0_i32_0 = arith.constant 0 : i32
    %c0_i32_1 = arith.constant 0 : i32
    return %c0_i32, %c0_i32_0 : i32, i32
  }
  func.func @transform_2(%arg0: i32, %arg1: i32) -> (i32, i32) {
    %c0_i32 = arith.constant 0 : i32
    %c0_i32_0 = arith.constant 0 : i32
    %c0_i32_1 = arith.constant 0 : i32
    return %c0_i32, %c0_i32_0 : i32, i32
  }
  func.func @transform_3(%arg0: i32, %arg1: i32) -> (i32, i32, i32, i32, i32) {
    %c0_i32 = arith.constant 0 : i32
    %c0_i32_0 = arith.constant 0 : i32
    %c0_i32_1 = arith.constant 0 : i32
    %c0_i32_2 = arith.constant 0 : i32
    return %arg0, %arg1, %c0_i32, %c0_i32_0, %c0_i32_1 : i32, i32, i32, i32, i32
  }
}

module attributes {stable_mosaic.version = 11 : i64} {
  func.func @_conv3x3_kernel(%arg0: i32, %arg1: i32, %arg2: memref<1x1x18x18x4xbf16, #tpu.memory_space<vmem>>, %arg3: memref<36x4xbf16, #tpu.memory_space<vmem>>, %arg4: memref<1x4xf32, #tpu.memory_space<vmem>>, %arg5: memref<1x1x16x16x4xbf16, #tpu.memory_space<vmem>>) attributes {dimension_semantics = [#tpu.dimension_semantics<parallel>, #tpu.dimension_semantics<parallel>], iteration_bounds = array<i64: 2, 1>, scalar_prefetch = 0 : i64, scratch_operands = 0 : i64, tpu.core_type = #tpu.core_type<tc>, window_params = [{transform_indices = @transform_0, window_bounds = array<i64: 1, 1, 18, 18, 4>}, {pipeline_mode = #tpu.pipeline_mode<synchronous>, transform_indices = @transform_1, window_bounds = array<i64: 36, 4>}, {pipeline_mode = #tpu.pipeline_mode<synchronous>, transform_indices = @transform_2, window_bounds = array<i64: 1, 4>}, {transform_indices = @transform_3, window_bounds = array<i64: 1, 1, 16, 16, 4>}]} {
    %cst = arith.constant 0.000000e+00 : f32
    %0 = vector.broadcast %cst : f32 to vector<256x4xf32>
    %c0 = arith.constant 0 : index
    %c0_0 = arith.constant 0 : index
    %c0_1 = arith.constant 0 : index
    %c0_2 = arith.constant 0 : index
    %c0_3 = arith.constant 0 : index
    %1 = vector.load %arg2[%c0, %c0_0, %c0_1, %c0_2, %c0_3] : memref<1x1x18x18x4xbf16, #tpu.memory_space<vmem>>, vector<1x1x18x18x4xbf16>
    %2 = vector.shape_cast %1 : vector<1x1x18x18x4xbf16> to vector<18x18x4xbf16>
    %3 = vector.extract_strided_slice %2 {offsets = [0, 0, 0], sizes = [16, 16, 4], strides = [1, 1, 1]} : vector<18x18x4xbf16> to vector<16x16x4xbf16>
    %4 = vector.extract_strided_slice %2 {offsets = [0, 1, 0], sizes = [16, 16, 4], strides = [1, 1, 1]} : vector<18x18x4xbf16> to vector<16x16x4xbf16>
    %5 = vector.extract_strided_slice %2 {offsets = [0, 2, 0], sizes = [16, 16, 4], strides = [1, 1, 1]} : vector<18x18x4xbf16> to vector<16x16x4xbf16>
    %6 = vector.extract_strided_slice %2 {offsets = [1, 0, 0], sizes = [16, 16, 4], strides = [1, 1, 1]} : vector<18x18x4xbf16> to vector<16x16x4xbf16>
    %7 = vector.extract_strided_slice %2 {offsets = [1, 1, 0], sizes = [16, 16, 4], strides = [1, 1, 1]} : vector<18x18x4xbf16> to vector<16x16x4xbf16>
    %8 = vector.extract_strided_slice %2 {offsets = [1, 2, 0], sizes = [16, 16, 4], strides = [1, 1, 1]} : vector<18x18x4xbf16> to vector<16x16x4xbf16>
    %9 = vector.extract_strided_slice %2 {offsets = [2, 0, 0], sizes = [16, 16, 4], strides = [1, 1, 1]} : vector<18x18x4xbf16> to vector<16x16x4xbf16>
    %10 = vector.extract_strided_slice %2 {offsets = [2, 1, 0], sizes = [16, 16, 4], strides = [1, 1, 1]} : vector<18x18x4xbf16> to vector<16x16x4xbf16>
    %11 = vector.extract_strided_slice %2 {offsets = [2, 2, 0], sizes = [16, 16, 4], strides = [1, 1, 1]} : vector<18x18x4xbf16> to vector<16x16x4xbf16>
    %12 = tpu.concatenate %3, %4, %5, %6, %7, %8, %9, %10, %11 in 2 : vector<16x16x4xbf16>, vector<16x16x4xbf16>, vector<16x16x4xbf16>, vector<16x16x4xbf16>, vector<16x16x4xbf16>, vector<16x16x4xbf16>, vector<16x16x4xbf16>, vector<16x16x4xbf16>, vector<16x16x4xbf16> -> vector<16x16x36xbf16>
    %13 = vector.shape_cast %12 : vector<16x16x36xbf16> to vector<256x36xbf16>
    %c0_4 = arith.constant 0 : index
    %c0_5 = arith.constant 0 : index
    %14 = vector.load %arg3[%c0_4, %c0_5] : memref<36x4xbf16, #tpu.memory_space<vmem>>, vector<36x4xbf16>
    %cst_6 = arith.constant dense<0.000000e+00> : vector<256x4xf32>
    %15 = tpu.matmul %13, %14, %cst_6 {dimension_numbers = #tpu.dot_dimension_numbers<[1], [0], [0], [1], [0, 0, 1, 1], [], []>} : vector<256x36xbf16>, vector<36x4xbf16>, vector<256x4xf32> -> vector<256x4xf32>
    %16 = arith.addf %0, %15 : vector<256x4xf32>
    %c0_7 = arith.constant 0 : index
    %c0_8 = arith.constant 0 : index
    %17 = vector.load %arg4[%c0_7, %c0_8] : memref<1x4xf32, #tpu.memory_space<vmem>>, vector<1x4xf32>
    %18 = vector.broadcast %17 : vector<1x4xf32> to vector<256x4xf32>
    %19 = arith.addf %16, %18 : vector<256x4xf32>
    %cst_9 = arith.constant 0.000000e+00 : f32
    %20 = vector.broadcast %cst_9 : f32 to vector<256x4xf32>
    %21 = arith.maximumf %19, %20 : vector<256x4xf32>
    %22 = vector.shape_cast %21 : vector<256x4xf32> to vector<16x16x4xf32>
    %23 = arith.truncf %22 : vector<16x16x4xf32> to vector<16x16x4xbf16>
    %c0_10 = arith.constant 0 : index
    %c0_11 = arith.constant 0 : index
    %c0_12 = arith.constant 0 : index
    %c0_13 = arith.constant 0 : index
    %c0_14 = arith.constant 0 : index
    %24 = vector.load %arg5[%c0_10, %c0_11, %c0_12, %c0_13, %c0_14] : memref<1x1x16x16x4xbf16, #tpu.memory_space<vmem>>, vector<1x1x16x16x4xbf16>
    %25 = vector.shape_cast %24 : vector<1x1x16x16x4xbf16> to vector<16x16x4xbf16>
    %26 = vector.shape_cast %23 : vector<16x16x4xbf16> to vector<1x1x16x16x4xbf16>
    tpu.vector_store %arg5[%c0_10, %c0_11, %c0_12, %c0_13, %c0_14], %26 {strides = array<i32>} : memref<1x1x16x16x4xbf16, #tpu.memory_space<vmem>>, vector<1x1x16x16x4xbf16>,
    return
  }
  func.func @transform_0(%arg0: i32, %arg1: i32) -> (i32, i32, i32, i32, i32) {
    %c0_i32 = arith.constant 0 : i32
    %c0_i32_0 = arith.constant 0 : i32
    %c0_i32_1 = arith.constant 0 : i32
    %c0_i32_2 = arith.constant 0 : i32
    return %arg0, %arg1, %c0_i32, %c0_i32_0, %c0_i32_1 : i32, i32, i32, i32, i32
  }
  func.func @transform_1(%arg0: i32, %arg1: i32) -> (i32, i32) {
    %c0_i32 = arith.constant 0 : i32
    %c0_i32_0 = arith.constant 0 : i32
    %c0_i32_1 = arith.constant 0 : i32
    return %c0_i32, %c0_i32_0 : i32, i32
  }
  func.func @transform_2(%arg0: i32, %arg1: i32) -> (i32, i32) {
    %c0_i32 = arith.constant 0 : i32
    %c0_i32_0 = arith.constant 0 : i32
    %c0_i32_1 = arith.constant 0 : i32
    return %c0_i32, %c0_i32_0 : i32, i32
  }
  func.func @transform_3(%arg0: i32, %arg1: i32) -> (i32, i32, i32, i32, i32) {
    %c0_i32 = arith.constant 0 : i32
    %c0_i32_0 = arith.constant 0 : i32
    %c0_i32_1 = arith.constant 0 : i32
    %c0_i32_2 = arith.constant 0 : i32
    return %arg0, %arg1, %c0_i32, %c0_i32_0, %c0_i32_1 : i32, i32, i32, i32, i32
  }
}

module attributes {stable_mosaic.version = 11 : i64} {
  func.func @_conv3x3_kernel(%arg0: i32, %arg1: i32, %arg2: memref<1x1x10x10x4xbf16, #tpu.memory_space<vmem>>, %arg3: memref<36x8xbf16, #tpu.memory_space<vmem>>, %arg4: memref<1x8xf32, #tpu.memory_space<vmem>>, %arg5: memref<1x1x8x8x8xbf16, #tpu.memory_space<vmem>>) attributes {dimension_semantics = [#tpu.dimension_semantics<parallel>, #tpu.dimension_semantics<parallel>], iteration_bounds = array<i64: 2, 1>, scalar_prefetch = 0 : i64, scratch_operands = 0 : i64, tpu.core_type = #tpu.core_type<tc>, window_params = [{transform_indices = @transform_0, window_bounds = array<i64: 1, 1, 10, 10, 4>}, {pipeline_mode = #tpu.pipeline_mode<synchronous>, transform_indices = @transform_1, window_bounds = array<i64: 36, 8>}, {pipeline_mode = #tpu.pipeline_mode<synchronous>, transform_indices = @transform_2, window_bounds = array<i64: 1, 8>}, {transform_indices = @transform_3, window_bounds = array<i64: 1, 1, 8, 8, 8>}]} {
    %cst = arith.constant 0.000000e+00 : f32
    %0 = vector.broadcast %cst : f32 to vector<64x8xf32>
    %c0 = arith.constant 0 : index
    %c0_0 = arith.constant 0 : index
    %c0_1 = arith.constant 0 : index
    %c0_2 = arith.constant 0 : index
    %c0_3 = arith.constant 0 : index
    %1 = vector.load %arg2[%c0, %c0_0, %c0_1, %c0_2, %c0_3] : memref<1x1x10x10x4xbf16, #tpu.memory_space<vmem>>, vector<1x1x10x10x4xbf16>
    %2 = vector.shape_cast %1 : vector<1x1x10x10x4xbf16> to vector<10x10x4xbf16>
    %3 = vector.extract_strided_slice %2 {offsets = [0, 0, 0], sizes = [8, 8, 4], strides = [1, 1, 1]} : vector<10x10x4xbf16> to vector<8x8x4xbf16>
    %4 = vector.extract_strided_slice %2 {offsets = [0, 1, 0], sizes = [8, 8, 4], strides = [1, 1, 1]} : vector<10x10x4xbf16> to vector<8x8x4xbf16>
    %5 = vector.extract_strided_slice %2 {offsets = [0, 2, 0], sizes = [8, 8, 4], strides = [1, 1, 1]} : vector<10x10x4xbf16> to vector<8x8x4xbf16>
    %6 = vector.extract_strided_slice %2 {offsets = [1, 0, 0], sizes = [8, 8, 4], strides = [1, 1, 1]} : vector<10x10x4xbf16> to vector<8x8x4xbf16>
    %7 = vector.extract_strided_slice %2 {offsets = [1, 1, 0], sizes = [8, 8, 4], strides = [1, 1, 1]} : vector<10x10x4xbf16> to vector<8x8x4xbf16>
    %8 = vector.extract_strided_slice %2 {offsets = [1, 2, 0], sizes = [8, 8, 4], strides = [1, 1, 1]} : vector<10x10x4xbf16> to vector<8x8x4xbf16>
    %9 = vector.extract_strided_slice %2 {offsets = [2, 0, 0], sizes = [8, 8, 4], strides = [1, 1, 1]} : vector<10x10x4xbf16> to vector<8x8x4xbf16>
    %10 = vector.extract_strided_slice %2 {offsets = [2, 1, 0], sizes = [8, 8, 4], strides = [1, 1, 1]} : vector<10x10x4xbf16> to vector<8x8x4xbf16>
    %11 = vector.extract_strided_slice %2 {offsets = [2, 2, 0], sizes = [8, 8, 4], strides = [1, 1, 1]} : vector<10x10x4xbf16> to vector<8x8x4xbf16>
    %12 = tpu.concatenate %3, %4, %5, %6, %7, %8, %9, %10, %11 in 2 : vector<8x8x4xbf16>, vector<8x8x4xbf16>, vector<8x8x4xbf16>, vector<8x8x4xbf16>, vector<8x8x4xbf16>, vector<8x8x4xbf16>, vector<8x8x4xbf16>, vector<8x8x4xbf16>, vector<8x8x4xbf16> -> vector<8x8x36xbf16>
    %13 = vector.shape_cast %12 : vector<8x8x36xbf16> to vector<64x36xbf16>
    %c0_4 = arith.constant 0 : index
    %c0_5 = arith.constant 0 : index
    %14 = vector.load %arg3[%c0_4, %c0_5] : memref<36x8xbf16, #tpu.memory_space<vmem>>, vector<36x8xbf16>
    %cst_6 = arith.constant dense<0.000000e+00> : vector<64x8xf32>
    %15 = tpu.matmul %13, %14, %cst_6 {dimension_numbers = #tpu.dot_dimension_numbers<[1], [0], [0], [1], [0, 0, 1, 1], [], []>} : vector<64x36xbf16>, vector<36x8xbf16>, vector<64x8xf32> -> vector<64x8xf32>
    %16 = arith.addf %0, %15 : vector<64x8xf32>
    %c0_7 = arith.constant 0 : index
    %c0_8 = arith.constant 0 : index
    %17 = vector.load %arg4[%c0_7, %c0_8] : memref<1x8xf32, #tpu.memory_space<vmem>>, vector<1x8xf32>
    %18 = vector.broadcast %17 : vector<1x8xf32> to vector<64x8xf32>
    %19 = arith.addf %16, %18 : vector<64x8xf32>
    %cst_9 = arith.constant 0.000000e+00 : f32
    %20 = vector.broadcast %cst_9 : f32 to vector<64x8xf32>
    %21 = arith.maximumf %19, %20 : vector<64x8xf32>
    %22 = vector.shape_cast %21 : vector<64x8xf32> to vector<8x8x8xf32>
    %23 = arith.truncf %22 : vector<8x8x8xf32> to vector<8x8x8xbf16>
    %c0_10 = arith.constant 0 : index
    %c0_11 = arith.constant 0 : index
    %c0_12 = arith.constant 0 : index
    %c0_13 = arith.constant 0 : index
    %c0_14 = arith.constant 0 : index
    %24 = vector.load %arg5[%c0_10, %c0_11, %c0_12, %c0_13, %c0_14] : memref<1x1x8x8x8xbf16, #tpu.memory_space<vmem>>, vector<1x1x8x8x8xbf16>
    %25 = vector.shape_cast %24 : vector<1x1x8x8x8xbf16> to vector<8x8x8xbf16>
    %26 = vector.shape_cast %23 : vector<8x8x8xbf16> to vector<1x1x8x8x8xbf16>
    tpu.vector_store %arg5[%c0_10, %c0_11, %c0_12, %c0_13, %c0_14], %26 {strides = array<i32>} : memref<1x1x8x8x8xbf16, #tpu.memory_space<vmem>>, vector<1x1x8x8x8xbf16>,
    return
  }
  func.func @transform_0(%arg0: i32, %arg1: i32) -> (i32, i32, i32, i32, i32) {
    %c0_i32 = arith.constant 0 : i32
    %c0_i32_0 = arith.constant 0 : i32
    %c0_i32_1 = arith.constant 0 : i32
    %c0_i32_2 = arith.constant 0 : i32
    return %arg0, %arg1, %c0_i32, %c0_i32_0, %c0_i32_1 : i32, i32, i32, i32, i32
  }
  func.func @transform_1(%arg0: i32, %arg1: i32) -> (i32, i32) {
    %c0_i32 = arith.constant 0 : i32
    %c0_i32_0 = arith.constant 0 : i32
    %c0_i32_1 = arith.constant 0 : i32
    return %c0_i32, %c0_i32_0 : i32, i32
  }
  func.func @transform_2(%arg0: i32, %arg1: i32) -> (i32, i32) {
    %c0_i32 = arith.constant 0 : i32
    %c0_i32_0 = arith.constant 0 : i32
    %c0_i32_1 = arith.constant 0 : i32
    return %c0_i32, %c0_i32_0 : i32, i32
  }
  func.func @transform_3(%arg0: i32, %arg1: i32) -> (i32, i32, i32, i32, i32) {
    %c0_i32 = arith.constant 0 : i32
    %c0_i32_0 = arith.constant 0 : i32
    %c0_i32_1 = arith.constant 0 : i32
    %c0_i32_2 = arith.constant 0 : i32
    return %arg0, %arg1, %c0_i32, %c0_i32_0, %c0_i32_1 : i32, i32, i32, i32, i32
  }
}

module attributes {stable_mosaic.version = 11 : i64} {
  func.func @_conv3x3_kernel(%arg0: i32, %arg1: i32, %arg2: memref<1x1x10x10x8xbf16, #tpu.memory_space<vmem>>, %arg3: memref<72x8xbf16, #tpu.memory_space<vmem>>, %arg4: memref<1x8xf32, #tpu.memory_space<vmem>>, %arg5: memref<1x1x8x8x8xbf16, #tpu.memory_space<vmem>>) attributes {dimension_semantics = [#tpu.dimension_semantics<parallel>, #tpu.dimension_semantics<parallel>], iteration_bounds = array<i64: 2, 1>, scalar_prefetch = 0 : i64, scratch_operands = 0 : i64, tpu.core_type = #tpu.core_type<tc>, window_params = [{transform_indices = @transform_0, window_bounds = array<i64: 1, 1, 10, 10, 8>}, {pipeline_mode = #tpu.pipeline_mode<synchronous>, transform_indices = @transform_1, window_bounds = array<i64: 72, 8>}, {pipeline_mode = #tpu.pipeline_mode<synchronous>, transform_indices = @transform_2, window_bounds = array<i64: 1, 8>}, {transform_indices = @transform_3, window_bounds = array<i64: 1, 1, 8, 8, 8>}]} {
    %cst = arith.constant 0.000000e+00 : f32
    %0 = vector.broadcast %cst : f32 to vector<64x8xf32>
    %c0 = arith.constant 0 : index
    %c0_0 = arith.constant 0 : index
    %c0_1 = arith.constant 0 : index
    %c0_2 = arith.constant 0 : index
    %c0_3 = arith.constant 0 : index
    %1 = vector.load %arg2[%c0, %c0_0, %c0_1, %c0_2, %c0_3] : memref<1x1x10x10x8xbf16, #tpu.memory_space<vmem>>, vector<1x1x10x10x8xbf16>
    %2 = vector.shape_cast %1 : vector<1x1x10x10x8xbf16> to vector<10x10x8xbf16>
    %3 = vector.extract_strided_slice %2 {offsets = [0, 0, 0], sizes = [8, 8, 8], strides = [1, 1, 1]} : vector<10x10x8xbf16> to vector<8x8x8xbf16>
    %4 = vector.extract_strided_slice %2 {offsets = [0, 1, 0], sizes = [8, 8, 8], strides = [1, 1, 1]} : vector<10x10x8xbf16> to vector<8x8x8xbf16>
    %5 = vector.extract_strided_slice %2 {offsets = [0, 2, 0], sizes = [8, 8, 8], strides = [1, 1, 1]} : vector<10x10x8xbf16> to vector<8x8x8xbf16>
    %6 = vector.extract_strided_slice %2 {offsets = [1, 0, 0], sizes = [8, 8, 8], strides = [1, 1, 1]} : vector<10x10x8xbf16> to vector<8x8x8xbf16>
    %7 = vector.extract_strided_slice %2 {offsets = [1, 1, 0], sizes = [8, 8, 8], strides = [1, 1, 1]} : vector<10x10x8xbf16> to vector<8x8x8xbf16>
    %8 = vector.extract_strided_slice %2 {offsets = [1, 2, 0], sizes = [8, 8, 8], strides = [1, 1, 1]} : vector<10x10x8xbf16> to vector<8x8x8xbf16>
    %9 = vector.extract_strided_slice %2 {offsets = [2, 0, 0], sizes = [8, 8, 8], strides = [1, 1, 1]} : vector<10x10x8xbf16> to vector<8x8x8xbf16>
    %10 = vector.extract_strided_slice %2 {offsets = [2, 1, 0], sizes = [8, 8, 8], strides = [1, 1, 1]} : vector<10x10x8xbf16> to vector<8x8x8xbf16>
    %11 = vector.extract_strided_slice %2 {offsets = [2, 2, 0], sizes = [8, 8, 8], strides = [1, 1, 1]} : vector<10x10x8xbf16> to vector<8x8x8xbf16>
    %12 = tpu.concatenate %3, %4, %5, %6, %7, %8, %9, %10, %11 in 2 : vector<8x8x8xbf16>, vector<8x8x8xbf16>, vector<8x8x8xbf16>, vector<8x8x8xbf16>, vector<8x8x8xbf16>, vector<8x8x8xbf16>, vector<8x8x8xbf16>, vector<8x8x8xbf16>, vector<8x8x8xbf16> -> vector<8x8x72xbf16>
    %13 = vector.shape_cast %12 : vector<8x8x72xbf16> to vector<64x72xbf16>
    %c0_4 = arith.constant 0 : index
    %c0_5 = arith.constant 0 : index
    %14 = vector.load %arg3[%c0_4, %c0_5] : memref<72x8xbf16, #tpu.memory_space<vmem>>, vector<72x8xbf16>
    %cst_6 = arith.constant dense<0.000000e+00> : vector<64x8xf32>
    %15 = tpu.matmul %13, %14, %cst_6 {dimension_numbers = #tpu.dot_dimension_numbers<[1], [0], [0], [1], [0, 0, 1, 1], [], []>} : vector<64x72xbf16>, vector<72x8xbf16>, vector<64x8xf32> -> vector<64x8xf32>
    %16 = arith.addf %0, %15 : vector<64x8xf32>
    %c0_7 = arith.constant 0 : index
    %c0_8 = arith.constant 0 : index
    %17 = vector.load %arg4[%c0_7, %c0_8] : memref<1x8xf32, #tpu.memory_space<vmem>>, vector<1x8xf32>
    %18 = vector.broadcast %17 : vector<1x8xf32> to vector<64x8xf32>
    %19 = arith.addf %16, %18 : vector<64x8xf32>
    %cst_9 = arith.constant 0.000000e+00 : f32
    %20 = vector.broadcast %cst_9 : f32 to vector<64x8xf32>
    %21 = arith.maximumf %19, %20 : vector<64x8xf32>
    %22 = vector.shape_cast %21 : vector<64x8xf32> to vector<8x8x8xf32>
    %23 = arith.truncf %22 : vector<8x8x8xf32> to vector<8x8x8xbf16>
    %c0_10 = arith.constant 0 : index
    %c0_11 = arith.constant 0 : index
    %c0_12 = arith.constant 0 : index
    %c0_13 = arith.constant 0 : index
    %c0_14 = arith.constant 0 : index
    %24 = vector.load %arg5[%c0_10, %c0_11, %c0_12, %c0_13, %c0_14] : memref<1x1x8x8x8xbf16, #tpu.memory_space<vmem>>, vector<1x1x8x8x8xbf16>
    %25 = vector.shape_cast %24 : vector<1x1x8x8x8xbf16> to vector<8x8x8xbf16>
    %26 = vector.shape_cast %23 : vector<8x8x8xbf16> to vector<1x1x8x8x8xbf16>
    tpu.vector_store %arg5[%c0_10, %c0_11, %c0_12, %c0_13, %c0_14], %26 {strides = array<i32>} : memref<1x1x8x8x8xbf16, #tpu.memory_space<vmem>>, vector<1x1x8x8x8xbf16>,
    return
  }
  func.func @transform_0(%arg0: i32, %arg1: i32) -> (i32, i32, i32, i32, i32) {
    %c0_i32 = arith.constant 0 : i32
    %c0_i32_0 = arith.constant 0 : i32
    %c0_i32_1 = arith.constant 0 : i32
    %c0_i32_2 = arith.constant 0 : i32
    return %arg0, %arg1, %c0_i32, %c0_i32_0, %c0_i32_1 : i32, i32, i32, i32, i32
  }
  func.func @transform_1(%arg0: i32, %arg1: i32) -> (i32, i32) {
    %c0_i32 = arith.constant 0 : i32
    %c0_i32_0 = arith.constant 0 : i32
    %c0_i32_1 = arith.constant 0 : i32
    return %c0_i32, %c0_i32_0 : i32, i32
  }
  func.func @transform_2(%arg0: i32, %arg1: i32) -> (i32, i32) {
    %c0_i32 = arith.constant 0 : i32
    %c0_i32_0 = arith.constant 0 : i32
    %c0_i32_1 = arith.constant 0 : i32
    return %c0_i32, %c0_i32_0 : i32, i32
  }
  func.func @transform_3(%arg0: i32, %arg1: i32) -> (i32, i32, i32, i32, i32) {
    %c0_i32 = arith.constant 0 : i32
    %c0_i32_0 = arith.constant 0 : i32
    %c0_i32_1 = arith.constant 0 : i32
    %c0_i32_2 = arith.constant 0 : i32
    return %arg0, %arg1, %c0_i32, %c0_i32_0, %c0_i32_1 : i32, i32, i32, i32, i32
  }
}

module attributes {stable_mosaic.version = 11 : i64} {
  func.func @_conv3x3_kernel(%arg0: i32, %arg1: i32, %arg2: memref<1x1x6x6x8xbf16, #tpu.memory_space<vmem>>, %arg3: memref<72x16xbf16, #tpu.memory_space<vmem>>, %arg4: memref<1x16xf32, #tpu.memory_space<vmem>>, %arg5: memref<1x1x4x4x16xbf16, #tpu.memory_space<vmem>>) attributes {dimension_semantics = [#tpu.dimension_semantics<parallel>, #tpu.dimension_semantics<parallel>], iteration_bounds = array<i64: 2, 1>, scalar_prefetch = 0 : i64, scratch_operands = 0 : i64, tpu.core_type = #tpu.core_type<tc>, window_params = [{transform_indices = @transform_0, window_bounds = array<i64: 1, 1, 6, 6, 8>}, {pipeline_mode = #tpu.pipeline_mode<synchronous>, transform_indices = @transform_1, window_bounds = array<i64: 72, 16>}, {pipeline_mode = #tpu.pipeline_mode<synchronous>, transform_indices = @transform_2, window_bounds = array<i64: 1, 16>}, {transform_indices = @transform_3, window_bounds = array<i64: 1, 1, 4, 4, 16>}]} {
    %cst = arith.constant 0.000000e+00 : f32
    %0 = vector.broadcast %cst : f32 to vector<16x16xf32>
    %c0 = arith.constant 0 : index
    %c0_0 = arith.constant 0 : index
    %c0_1 = arith.constant 0 : index
    %c0_2 = arith.constant 0 : index
    %c0_3 = arith.constant 0 : index
    %1 = vector.load %arg2[%c0, %c0_0, %c0_1, %c0_2, %c0_3] : memref<1x1x6x6x8xbf16, #tpu.memory_space<vmem>>, vector<1x1x6x6x8xbf16>
    %2 = vector.shape_cast %1 : vector<1x1x6x6x8xbf16> to vector<6x6x8xbf16>
    %3 = vector.extract_strided_slice %2 {offsets = [0, 0, 0], sizes = [4, 4, 8], strides = [1, 1, 1]} : vector<6x6x8xbf16> to vector<4x4x8xbf16>
    %4 = vector.extract_strided_slice %2 {offsets = [0, 1, 0], sizes = [4, 4, 8], strides = [1, 1, 1]} : vector<6x6x8xbf16> to vector<4x4x8xbf16>
    %5 = vector.extract_strided_slice %2 {offsets = [0, 2, 0], sizes = [4, 4, 8], strides = [1, 1, 1]} : vector<6x6x8xbf16> to vector<4x4x8xbf16>
    %6 = vector.extract_strided_slice %2 {offsets = [1, 0, 0], sizes = [4, 4, 8], strides = [1, 1, 1]} : vector<6x6x8xbf16> to vector<4x4x8xbf16>
    %7 = vector.extract_strided_slice %2 {offsets = [1, 1, 0], sizes = [4, 4, 8], strides = [1, 1, 1]} : vector<6x6x8xbf16> to vector<4x4x8xbf16>
    %8 = vector.extract_strided_slice %2 {offsets = [1, 2, 0], sizes = [4, 4, 8], strides = [1, 1, 1]} : vector<6x6x8xbf16> to vector<4x4x8xbf16>
    %9 = vector.extract_strided_slice %2 {offsets = [2, 0, 0], sizes = [4, 4, 8], strides = [1, 1, 1]} : vector<6x6x8xbf16> to vector<4x4x8xbf16>
    %10 = vector.extract_strided_slice %2 {offsets = [2, 1, 0], sizes = [4, 4, 8], strides = [1, 1, 1]} : vector<6x6x8xbf16> to vector<4x4x8xbf16>
    %11 = vector.extract_strided_slice %2 {offsets = [2, 2, 0], sizes = [4, 4, 8], strides = [1, 1, 1]} : vector<6x6x8xbf16> to vector<4x4x8xbf16>
    %12 = tpu.concatenate %3, %4, %5, %6, %7, %8, %9, %10, %11 in 2 : vector<4x4x8xbf16>, vector<4x4x8xbf16>, vector<4x4x8xbf16>, vector<4x4x8xbf16>, vector<4x4x8xbf16>, vector<4x4x8xbf16>, vector<4x4x8xbf16>, vector<4x4x8xbf16>, vector<4x4x8xbf16> -> vector<4x4x72xbf16>
    %13 = vector.shape_cast %12 : vector<4x4x72xbf16> to vector<16x72xbf16>
    %c0_4 = arith.constant 0 : index
    %c0_5 = arith.constant 0 : index
    %14 = vector.load %arg3[%c0_4, %c0_5] : memref<72x16xbf16, #tpu.memory_space<vmem>>, vector<72x16xbf16>
    %cst_6 = arith.constant dense<0.000000e+00> : vector<16x16xf32>
    %15 = tpu.matmul %13, %14, %cst_6 {dimension_numbers = #tpu.dot_dimension_numbers<[1], [0], [0], [1], [0, 0, 1, 1], [], []>} : vector<16x72xbf16>, vector<72x16xbf16>, vector<16x16xf32> -> vector<16x16xf32>
    %16 = arith.addf %0, %15 : vector<16x16xf32>
    %c0_7 = arith.constant 0 : index
    %c0_8 = arith.constant 0 : index
    %17 = vector.load %arg4[%c0_7, %c0_8] : memref<1x16xf32, #tpu.memory_space<vmem>>, vector<1x16xf32>
    %18 = vector.broadcast %17 : vector<1x16xf32> to vector<16x16xf32>
    %19 = arith.addf %16, %18 : vector<16x16xf32>
    %cst_9 = arith.constant 0.000000e+00 : f32
    %20 = vector.broadcast %cst_9 : f32 to vector<16x16xf32>
    %21 = arith.maximumf %19, %20 : vector<16x16xf32>
    %22 = vector.shape_cast %21 : vector<16x16xf32> to vector<4x4x16xf32>
    %23 = arith.truncf %22 : vector<4x4x16xf32> to vector<4x4x16xbf16>
    %c0_10 = arith.constant 0 : index
    %c0_11 = arith.constant 0 : index
    %c0_12 = arith.constant 0 : index
    %c0_13 = arith.constant 0 : index
    %c0_14 = arith.constant 0 : index
    %24 = vector.load %arg5[%c0_10, %c0_11, %c0_12, %c0_13, %c0_14] : memref<1x1x4x4x16xbf16, #tpu.memory_space<vmem>>, vector<1x1x4x4x16xbf16>
    %25 = vector.shape_cast %24 : vector<1x1x4x4x16xbf16> to vector<4x4x16xbf16>
    %26 = vector.shape_cast %23 : vector<4x4x16xbf16> to vector<1x1x4x4x16xbf16>
    tpu.vector_store %arg5[%c0_10, %c0_11, %c0_12, %c0_13, %c0_14], %26 {strides = array<i32>} : memref<1x1x4x4x16xbf16, #tpu.memory_space<vmem>>, vector<1x1x4x4x16xbf16>,
    return
  }
  func.func @transform_0(%arg0: i32, %arg1: i32) -> (i32, i32, i32, i32, i32) {
    %c0_i32 = arith.constant 0 : i32
    %c0_i32_0 = arith.constant 0 : i32
    %c0_i32_1 = arith.constant 0 : i32
    %c0_i32_2 = arith.constant 0 : i32
    return %arg0, %arg1, %c0_i32, %c0_i32_0, %c0_i32_1 : i32, i32, i32, i32, i32
  }
  func.func @transform_1(%arg0: i32, %arg1: i32) -> (i32, i32) {
    %c0_i32 = arith.constant 0 : i32
    %c0_i32_0 = arith.constant 0 : i32
    %c0_i32_1 = arith.constant 0 : i32
    return %c0_i32, %c0_i32_0 : i32, i32
  }
  func.func @transform_2(%arg0: i32, %arg1: i32) -> (i32, i32) {
    %c0_i32 = arith.constant 0 : i32
    %c0_i32_0 = arith.constant 0 : i32
    %c0_i32_1 = arith.constant 0 : i32
    return %c0_i32, %c0_i32_0 : i32, i32
  }
  func.func @transform_3(%arg0: i32, %arg1: i32) -> (i32, i32, i32, i32, i32) {
    %c0_i32 = arith.constant 0 : i32
    %c0_i32_0 = arith.constant 0 : i32
    %c0_i32_1 = arith.constant 0 : i32
    %c0_i32_2 = arith.constant 0 : i32
    return %arg0, %arg1, %c0_i32, %c0_i32_0, %c0_i32_1 : i32, i32, i32, i32, i32
  }
}

module attributes {stable_mosaic.version = 11 : i64} {
  func.func @_conv3x3_kernel(%arg0: i32, %arg1: i32, %arg2: memref<1x1x4x4x16xbf16, #tpu.memory_space<vmem>>, %arg3: memref<144x32xbf16, #tpu.memory_space<vmem>>, %arg4: memref<1x32xf32, #tpu.memory_space<vmem>>, %arg5: memref<1x1x2x2x32xbf16, #tpu.memory_space<vmem>>) attributes {dimension_semantics = [#tpu.dimension_semantics<parallel>, #tpu.dimension_semantics<parallel>], iteration_bounds = array<i64: 2, 1>, scalar_prefetch = 0 : i64, scratch_operands = 0 : i64, tpu.core_type = #tpu.core_type<tc>, window_params = [{transform_indices = @transform_0, window_bounds = array<i64: 1, 1, 4, 4, 16>}, {pipeline_mode = #tpu.pipeline_mode<synchronous>, transform_indices = @transform_1, window_bounds = array<i64: 144, 32>}, {pipeline_mode = #tpu.pipeline_mode<synchronous>, transform_indices = @transform_2, window_bounds = array<i64: 1, 32>}, {transform_indices = @transform_3, window_bounds = array<i64: 1, 1, 2, 2, 32>}]} {
    %cst = arith.constant 0.000000e+00 : f32
    %0 = vector.broadcast %cst : f32 to vector<4x32xf32>
    %c0 = arith.constant 0 : index
    %c0_0 = arith.constant 0 : index
    %c0_1 = arith.constant 0 : index
    %c0_2 = arith.constant 0 : index
    %c0_3 = arith.constant 0 : index
    %1 = vector.load %arg2[%c0, %c0_0, %c0_1, %c0_2, %c0_3] : memref<1x1x4x4x16xbf16, #tpu.memory_space<vmem>>, vector<1x1x4x4x16xbf16>
    %2 = vector.shape_cast %1 : vector<1x1x4x4x16xbf16> to vector<4x4x16xbf16>
    %3 = vector.extract_strided_slice %2 {offsets = [0, 0, 0], sizes = [2, 2, 16], strides = [1, 1, 1]} : vector<4x4x16xbf16> to vector<2x2x16xbf16>
    %4 = vector.extract_strided_slice %2 {offsets = [0, 1, 0], sizes = [2, 2, 16], strides = [1, 1, 1]} : vector<4x4x16xbf16> to vector<2x2x16xbf16>
    %5 = vector.extract_strided_slice %2 {offsets = [0, 2, 0], sizes = [2, 2, 16], strides = [1, 1, 1]} : vector<4x4x16xbf16> to vector<2x2x16xbf16>
    %6 = vector.extract_strided_slice %2 {offsets = [1, 0, 0], sizes = [2, 2, 16], strides = [1, 1, 1]} : vector<4x4x16xbf16> to vector<2x2x16xbf16>
    %7 = vector.extract_strided_slice %2 {offsets = [1, 1, 0], sizes = [2, 2, 16], strides = [1, 1, 1]} : vector<4x4x16xbf16> to vector<2x2x16xbf16>
    %8 = vector.extract_strided_slice %2 {offsets = [1, 2, 0], sizes = [2, 2, 16], strides = [1, 1, 1]} : vector<4x4x16xbf16> to vector<2x2x16xbf16>
    %9 = vector.extract_strided_slice %2 {offsets = [2, 0, 0], sizes = [2, 2, 16], strides = [1, 1, 1]} : vector<4x4x16xbf16> to vector<2x2x16xbf16>
    %10 = vector.extract_strided_slice %2 {offsets = [2, 1, 0], sizes = [2, 2, 16], strides = [1, 1, 1]} : vector<4x4x16xbf16> to vector<2x2x16xbf16>
    %11 = vector.extract_strided_slice %2 {offsets = [2, 2, 0], sizes = [2, 2, 16], strides = [1, 1, 1]} : vector<4x4x16xbf16> to vector<2x2x16xbf16>
    %12 = tpu.concatenate %3, %4, %5, %6, %7, %8, %9, %10, %11 in 2 : vector<2x2x16xbf16>, vector<2x2x16xbf16>, vector<2x2x16xbf16>, vector<2x2x16xbf16>, vector<2x2x16xbf16>, vector<2x2x16xbf16>, vector<2x2x16xbf16>, vector<2x2x16xbf16>, vector<2x2x16xbf16> -> vector<2x2x144xbf16>
    %13 = vector.shape_cast %12 : vector<2x2x144xbf16> to vector<4x144xbf16>
    %c0_4 = arith.constant 0 : index
    %c0_5 = arith.constant 0 : index
    %14 = vector.load %arg3[%c0_4, %c0_5] : memref<144x32xbf16, #tpu.memory_space<vmem>>, vector<144x32xbf16>
    %cst_6 = arith.constant dense<0.000000e+00> : vector<4x32xf32>
    %15 = tpu.matmul %13, %14, %cst_6 {dimension_numbers = #tpu.dot_dimension_numbers<[1], [0], [0], [1], [0, 0, 1, 1], [], []>} : vector<4x144xbf16>, vector<144x32xbf16>, vector<4x32xf32> -> vector<4x32xf32>
    %16 = arith.addf %0, %15 : vector<4x32xf32>
    %c0_7 = arith.constant 0 : index
    %c0_8 = arith.constant 0 : index
    %17 = vector.load %arg4[%c0_7, %c0_8] : memref<1x32xf32, #tpu.memory_space<vmem>>, vector<1x32xf32>
    %18 = vector.broadcast %17 : vector<1x32xf32> to vector<4x32xf32>
    %19 = arith.addf %16, %18 : vector<4x32xf32>
    %cst_9 = arith.constant 0.000000e+00 : f32
    %20 = vector.broadcast %cst_9 : f32 to vector<4x32xf32>
    %21 = arith.maximumf %19, %20 : vector<4x32xf32>
    %22 = vector.shape_cast %21 : vector<4x32xf32> to vector<2x2x32xf32>
    %23 = arith.truncf %22 : vector<2x2x32xf32> to vector<2x2x32xbf16>
    %c0_10 = arith.constant 0 : index
    %c0_11 = arith.constant 0 : index
    %c0_12 = arith.constant 0 : index
    %c0_13 = arith.constant 0 : index
    %c0_14 = arith.constant 0 : index
    %24 = vector.load %arg5[%c0_10, %c0_11, %c0_12, %c0_13, %c0_14] : memref<1x1x2x2x32xbf16, #tpu.memory_space<vmem>>, vector<1x1x2x2x32xbf16>
    %25 = vector.shape_cast %24 : vector<1x1x2x2x32xbf16> to vector<2x2x32xbf16>
    %26 = vector.shape_cast %23 : vector<2x2x32xbf16> to vector<1x1x2x2x32xbf16>
    tpu.vector_store %arg5[%c0_10, %c0_11, %c0_12, %c0_13, %c0_14], %26 {strides = array<i32>} : memref<1x1x2x2x32xbf16, #tpu.memory_space<vmem>>, vector<1x1x2x2x32xbf16>,
    return
  }
  func.func @transform_0(%arg0: i32, %arg1: i32) -> (i32, i32, i32, i32, i32) {
    %c0_i32 = arith.constant 0 : i32
    %c0_i32_0 = arith.constant 0 : i32
    %c0_i32_1 = arith.constant 0 : i32
    %c0_i32_2 = arith.constant 0 : i32
    return %arg0, %arg1, %c0_i32, %c0_i32_0, %c0_i32_1 : i32, i32, i32, i32, i32
  }
  func.func @transform_1(%arg0: i32, %arg1: i32) -> (i32, i32) {
    %c0_i32 = arith.constant 0 : i32
    %c0_i32_0 = arith.constant 0 : i32
    %c0_i32_1 = arith.constant 0 : i32
    return %c0_i32, %c0_i32_0 : i32, i32
  }
  func.func @transform_2(%arg0: i32, %arg1: i32) -> (i32, i32) {
    %c0_i32 = arith.constant 0 : i32
    %c0_i32_0 = arith.constant 0 : i32
    %c0_i32_1 = arith.constant 0 : i32
    return %c0_i32, %c0_i32_0 : i32, i32
  }
  func.func @transform_3(%arg0: i32, %arg1: i32) -> (i32, i32, i32, i32, i32) {
    %c0_i32 = arith.constant 0 : i32
    %c0_i32_0 = arith.constant 0 : i32
    %c0_i32_1 = arith.constant 0 : i32
    %c0_i32_2 = arith.constant 0 : i32
    return %arg0, %arg1, %c0_i32, %c0_i32_0, %c0_i32_1 : i32, i32, i32, i32, i32
  }
}

module attributes {stable_mosaic.version = 11 : i64} {
  func.func @_conv3x3_kernel(%arg0: i32, %arg1: i32, %arg2: memref<1x1x6x6x16xbf16, #tpu.memory_space<vmem>>, %arg3: memref<144x16xbf16, #tpu.memory_space<vmem>>, %arg4: memref<1x16xf32, #tpu.memory_space<vmem>>, %arg5: memref<1x1x4x4x16xbf16, #tpu.memory_space<vmem>>) attributes {dimension_semantics = [#tpu.dimension_semantics<parallel>, #tpu.dimension_semantics<parallel>], iteration_bounds = array<i64: 2, 1>, scalar_prefetch = 0 : i64, scratch_operands = 0 : i64, tpu.core_type = #tpu.core_type<tc>, window_params = [{transform_indices = @transform_0, window_bounds = array<i64: 1, 1, 6, 6, 16>}, {pipeline_mode = #tpu.pipeline_mode<synchronous>, transform_indices = @transform_1, window_bounds = array<i64: 144, 16>}, {pipeline_mode = #tpu.pipeline_mode<synchronous>, transform_indices = @transform_2, window_bounds = array<i64: 1, 16>}, {transform_indices = @transform_3, window_bounds = array<i64: 1, 1, 4, 4, 16>}]} {
    %cst = arith.constant 0.000000e+00 : f32
    %0 = vector.broadcast %cst : f32 to vector<16x16xf32>
    %c0 = arith.constant 0 : index
    %c0_0 = arith.constant 0 : index
    %c0_1 = arith.constant 0 : index
    %c0_2 = arith.constant 0 : index
    %c0_3 = arith.constant 0 : index
    %1 = vector.load %arg2[%c0, %c0_0, %c0_1, %c0_2, %c0_3] : memref<1x1x6x6x16xbf16, #tpu.memory_space<vmem>>, vector<1x1x6x6x16xbf16>
    %2 = vector.shape_cast %1 : vector<1x1x6x6x16xbf16> to vector<6x6x16xbf16>
    %3 = vector.extract_strided_slice %2 {offsets = [0, 0, 0], sizes = [4, 4, 16], strides = [1, 1, 1]} : vector<6x6x16xbf16> to vector<4x4x16xbf16>
    %4 = vector.extract_strided_slice %2 {offsets = [0, 1, 0], sizes = [4, 4, 16], strides = [1, 1, 1]} : vector<6x6x16xbf16> to vector<4x4x16xbf16>
    %5 = vector.extract_strided_slice %2 {offsets = [0, 2, 0], sizes = [4, 4, 16], strides = [1, 1, 1]} : vector<6x6x16xbf16> to vector<4x4x16xbf16>
    %6 = vector.extract_strided_slice %2 {offsets = [1, 0, 0], sizes = [4, 4, 16], strides = [1, 1, 1]} : vector<6x6x16xbf16> to vector<4x4x16xbf16>
    %7 = vector.extract_strided_slice %2 {offsets = [1, 1, 0], sizes = [4, 4, 16], strides = [1, 1, 1]} : vector<6x6x16xbf16> to vector<4x4x16xbf16>
    %8 = vector.extract_strided_slice %2 {offsets = [1, 2, 0], sizes = [4, 4, 16], strides = [1, 1, 1]} : vector<6x6x16xbf16> to vector<4x4x16xbf16>
    %9 = vector.extract_strided_slice %2 {offsets = [2, 0, 0], sizes = [4, 4, 16], strides = [1, 1, 1]} : vector<6x6x16xbf16> to vector<4x4x16xbf16>
    %10 = vector.extract_strided_slice %2 {offsets = [2, 1, 0], sizes = [4, 4, 16], strides = [1, 1, 1]} : vector<6x6x16xbf16> to vector<4x4x16xbf16>
    %11 = vector.extract_strided_slice %2 {offsets = [2, 2, 0], sizes = [4, 4, 16], strides = [1, 1, 1]} : vector<6x6x16xbf16> to vector<4x4x16xbf16>
    %12 = tpu.concatenate %3, %4, %5, %6, %7, %8, %9, %10, %11 in 2 : vector<4x4x16xbf16>, vector<4x4x16xbf16>, vector<4x4x16xbf16>, vector<4x4x16xbf16>, vector<4x4x16xbf16>, vector<4x4x16xbf16>, vector<4x4x16xbf16>, vector<4x4x16xbf16>, vector<4x4x16xbf16> -> vector<4x4x144xbf16>
    %13 = vector.shape_cast %12 : vector<4x4x144xbf16> to vector<16x144xbf16>
    %c0_4 = arith.constant 0 : index
    %c0_5 = arith.constant 0 : index
    %14 = vector.load %arg3[%c0_4, %c0_5] : memref<144x16xbf16, #tpu.memory_space<vmem>>, vector<144x16xbf16>
    %cst_6 = arith.constant dense<0.000000e+00> : vector<16x16xf32>
    %15 = tpu.matmul %13, %14, %cst_6 {dimension_numbers = #tpu.dot_dimension_numbers<[1], [0], [0], [1], [0, 0, 1, 1], [], []>} : vector<16x144xbf16>, vector<144x16xbf16>, vector<16x16xf32> -> vector<16x16xf32>
    %16 = arith.addf %0, %15 : vector<16x16xf32>
    %c0_7 = arith.constant 0 : index
    %c0_8 = arith.constant 0 : index
    %17 = vector.load %arg4[%c0_7, %c0_8] : memref<1x16xf32, #tpu.memory_space<vmem>>, vector<1x16xf32>
    %18 = vector.broadcast %17 : vector<1x16xf32> to vector<16x16xf32>
    %19 = arith.addf %16, %18 : vector<16x16xf32>
    %cst_9 = arith.constant 0.000000e+00 : f32
    %20 = vector.broadcast %cst_9 : f32 to vector<16x16xf32>
    %21 = arith.maximumf %19, %20 : vector<16x16xf32>
    %22 = vector.shape_cast %21 : vector<16x16xf32> to vector<4x4x16xf32>
    %23 = arith.truncf %22 : vector<4x4x16xf32> to vector<4x4x16xbf16>
    %c0_10 = arith.constant 0 : index
    %c0_11 = arith.constant 0 : index
    %c0_12 = arith.constant 0 : index
    %c0_13 = arith.constant 0 : index
    %c0_14 = arith.constant 0 : index
    %24 = vector.load %arg5[%c0_10, %c0_11, %c0_12, %c0_13, %c0_14] : memref<1x1x4x4x16xbf16, #tpu.memory_space<vmem>>, vector<1x1x4x4x16xbf16>
    %25 = vector.shape_cast %24 : vector<1x1x4x4x16xbf16> to vector<4x4x16xbf16>
    %26 = vector.shape_cast %23 : vector<4x4x16xbf16> to vector<1x1x4x4x16xbf16>
    tpu.vector_store %arg5[%c0_10, %c0_11, %c0_12, %c0_13, %c0_14], %26 {strides = array<i32>} : memref<1x1x4x4x16xbf16, #tpu.memory_space<vmem>>, vector<1x1x4x4x16xbf16>,
    return
  }
  func.func @transform_0(%arg0: i32, %arg1: i32) -> (i32, i32, i32, i32, i32) {
    %c0_i32 = arith.constant 0 : i32
    %c0_i32_0 = arith.constant 0 : i32
    %c0_i32_1 = arith.constant 0 : i32
    %c0_i32_2 = arith.constant 0 : i32
    return %arg0, %arg1, %c0_i32, %c0_i32_0, %c0_i32_1 : i32, i32, i32, i32, i32
  }
  func.func @transform_1(%arg0: i32, %arg1: i32) -> (i32, i32) {
    %c0_i32 = arith.constant 0 : i32
    %c0_i32_0 = arith.constant 0 : i32
    %c0_i32_1 = arith.constant 0 : i32
    return %c0_i32, %c0_i32_0 : i32, i32
  }
  func.func @transform_2(%arg0: i32, %arg1: i32) -> (i32, i32) {
    %c0_i32 = arith.constant 0 : i32
    %c0_i32_0 = arith.constant 0 : i32
    %c0_i32_1 = arith.constant 0 : i32
    return %c0_i32, %c0_i32_0 : i32, i32
  }
  func.func @transform_3(%arg0: i32, %arg1: i32) -> (i32, i32, i32, i32, i32) {
    %c0_i32 = arith.constant 0 : i32
    %c0_i32_0 = arith.constant 0 : i32
    %c0_i32_1 = arith.constant 0 : i32
    %c0_i32_2 = arith.constant 0 : i32
    return %arg0, %arg1, %c0_i32, %c0_i32_0, %c0_i32_1 : i32, i32, i32, i32, i32
  }
}

module attributes {stable_mosaic.version = 11 : i64} {
  func.func @_conv3x3_kernel(%arg0: i32, %arg1: i32, %arg2: memref<1x1x4x4x32xbf16, #tpu.memory_space<vmem>>, %arg3: memref<288x32xbf16, #tpu.memory_space<vmem>>, %arg4: memref<1x32xf32, #tpu.memory_space<vmem>>, %arg5: memref<1x1x2x2x32xbf16, #tpu.memory_space<vmem>>) attributes {dimension_semantics = [#tpu.dimension_semantics<parallel>, #tpu.dimension_semantics<parallel>], iteration_bounds = array<i64: 2, 1>, scalar_prefetch = 0 : i64, scratch_operands = 0 : i64, tpu.core_type = #tpu.core_type<tc>, window_params = [{transform_indices = @transform_0, window_bounds = array<i64: 1, 1, 4, 4, 32>}, {pipeline_mode = #tpu.pipeline_mode<synchronous>, transform_indices = @transform_1, window_bounds = array<i64: 288, 32>}, {pipeline_mode = #tpu.pipeline_mode<synchronous>, transform_indices = @transform_2, window_bounds = array<i64: 1, 32>}, {transform_indices = @transform_3, window_bounds = array<i64: 1, 1, 2, 2, 32>}]} {
    %cst = arith.constant 0.000000e+00 : f32
    %0 = vector.broadcast %cst : f32 to vector<4x32xf32>
    %c0 = arith.constant 0 : index
    %c0_0 = arith.constant 0 : index
    %c0_1 = arith.constant 0 : index
    %c0_2 = arith.constant 0 : index
    %c0_3 = arith.constant 0 : index
    %1 = vector.load %arg2[%c0, %c0_0, %c0_1, %c0_2, %c0_3] : memref<1x1x4x4x32xbf16, #tpu.memory_space<vmem>>, vector<1x1x4x4x32xbf16>
    %2 = vector.shape_cast %1 : vector<1x1x4x4x32xbf16> to vector<4x4x32xbf16>
    %3 = vector.extract_strided_slice %2 {offsets = [0, 0, 0], sizes = [2, 2, 32], strides = [1, 1, 1]} : vector<4x4x32xbf16> to vector<2x2x32xbf16>
    %4 = vector.extract_strided_slice %2 {offsets = [0, 1, 0], sizes = [2, 2, 32], strides = [1, 1, 1]} : vector<4x4x32xbf16> to vector<2x2x32xbf16>
    %5 = vector.extract_strided_slice %2 {offsets = [0, 2, 0], sizes = [2, 2, 32], strides = [1, 1, 1]} : vector<4x4x32xbf16> to vector<2x2x32xbf16>
    %6 = vector.extract_strided_slice %2 {offsets = [1, 0, 0], sizes = [2, 2, 32], strides = [1, 1, 1]} : vector<4x4x32xbf16> to vector<2x2x32xbf16>
    %7 = vector.extract_strided_slice %2 {offsets = [1, 1, 0], sizes = [2, 2, 32], strides = [1, 1, 1]} : vector<4x4x32xbf16> to vector<2x2x32xbf16>
    %8 = vector.extract_strided_slice %2 {offsets = [1, 2, 0], sizes = [2, 2, 32], strides = [1, 1, 1]} : vector<4x4x32xbf16> to vector<2x2x32xbf16>
    %9 = vector.extract_strided_slice %2 {offsets = [2, 0, 0], sizes = [2, 2, 32], strides = [1, 1, 1]} : vector<4x4x32xbf16> to vector<2x2x32xbf16>
    %10 = vector.extract_strided_slice %2 {offsets = [2, 1, 0], sizes = [2, 2, 32], strides = [1, 1, 1]} : vector<4x4x32xbf16> to vector<2x2x32xbf16>
    %11 = vector.extract_strided_slice %2 {offsets = [2, 2, 0], sizes = [2, 2, 32], strides = [1, 1, 1]} : vector<4x4x32xbf16> to vector<2x2x32xbf16>
    %12 = tpu.concatenate %3, %4, %5, %6, %7, %8, %9, %10, %11 in 2 : vector<2x2x32xbf16>, vector<2x2x32xbf16>, vector<2x2x32xbf16>, vector<2x2x32xbf16>, vector<2x2x32xbf16>, vector<2x2x32xbf16>, vector<2x2x32xbf16>, vector<2x2x32xbf16>, vector<2x2x32xbf16> -> vector<2x2x288xbf16>
    %13 = vector.shape_cast %12 : vector<2x2x288xbf16> to vector<4x288xbf16>
    %c0_4 = arith.constant 0 : index
    %c0_5 = arith.constant 0 : index
    %14 = vector.load %arg3[%c0_4, %c0_5] : memref<288x32xbf16, #tpu.memory_space<vmem>>, vector<288x32xbf16>
    %cst_6 = arith.constant dense<0.000000e+00> : vector<4x32xf32>
    %15 = tpu.matmul %13, %14, %cst_6 {dimension_numbers = #tpu.dot_dimension_numbers<[1], [0], [0], [1], [0, 0, 1, 1], [], []>} : vector<4x288xbf16>, vector<288x32xbf16>, vector<4x32xf32> -> vector<4x32xf32>
    %16 = arith.addf %0, %15 : vector<4x32xf32>
    %c0_7 = arith.constant 0 : index
    %c0_8 = arith.constant 0 : index
    %17 = vector.load %arg4[%c0_7, %c0_8] : memref<1x32xf32, #tpu.memory_space<vmem>>, vector<1x32xf32>
    %18 = vector.broadcast %17 : vector<1x32xf32> to vector<4x32xf32>
    %19 = arith.addf %16, %18 : vector<4x32xf32>
    %cst_9 = arith.constant 0.000000e+00 : f32
    %20 = vector.broadcast %cst_9 : f32 to vector<4x32xf32>
    %21 = arith.maximumf %19, %20 : vector<4x32xf32>
    %22 = vector.shape_cast %21 : vector<4x32xf32> to vector<2x2x32xf32>
    %23 = arith.truncf %22 : vector<2x2x32xf32> to vector<2x2x32xbf16>
    %c0_10 = arith.constant 0 : index
    %c0_11 = arith.constant 0 : index
    %c0_12 = arith.constant 0 : index
    %c0_13 = arith.constant 0 : index
    %c0_14 = arith.constant 0 : index
    %24 = vector.load %arg5[%c0_10, %c0_11, %c0_12, %c0_13, %c0_14] : memref<1x1x2x2x32xbf16, #tpu.memory_space<vmem>>, vector<1x1x2x2x32xbf16>
    %25 = vector.shape_cast %24 : vector<1x1x2x2x32xbf16> to vector<2x2x32xbf16>
    %26 = vector.shape_cast %23 : vector<2x2x32xbf16> to vector<1x1x2x2x32xbf16>
    tpu.vector_store %arg5[%c0_10, %c0_11, %c0_12, %c0_13, %c0_14], %26 {strides = array<i32>} : memref<1x1x2x2x32xbf16, #tpu.memory_space<vmem>>, vector<1x1x2x2x32xbf16>,
    return
  }
  func.func @transform_0(%arg0: i32, %arg1: i32) -> (i32, i32, i32, i32, i32) {
    %c0_i32 = arith.constant 0 : i32
    %c0_i32_0 = arith.constant 0 : i32
    %c0_i32_1 = arith.constant 0 : i32
    %c0_i32_2 = arith.constant 0 : i32
    return %arg0, %arg1, %c0_i32, %c0_i32_0, %c0_i32_1 : i32, i32, i32, i32, i32
  }
  func.func @transform_1(%arg0: i32, %arg1: i32) -> (i32, i32) {
    %c0_i32 = arith.constant 0 : i32
    %c0_i32_0 = arith.constant 0 : i32
    %c0_i32_1 = arith.constant 0 : i32
    return %c0_i32, %c0_i32_0 : i32, i32
  }
  func.func @transform_2(%arg0: i32, %arg1: i32) -> (i32, i32) {
    %c0_i32 = arith.constant 0 : i32
    %c0_i32_0 = arith.constant 0 : i32
    %c0_i32_1 = arith.constant 0 : i32
    return %c0_i32, %c0_i32_0 : i32, i32
  }
  func.func @transform_3(%arg0: i32, %arg1: i32) -> (i32, i32, i32, i32, i32) {
    %c0_i32 = arith.constant 0 : i32
    %c0_i32_0 = arith.constant 0 : i32
    %c0_i32_1 = arith.constant 0 : i32
    %c0_i32_2 = arith.constant 0 : i32
    return %arg0, %arg1, %c0_i32, %c0_i32_0, %c0_i32_1 : i32, i32, i32, i32, i32
  }
}

module attributes {stable_mosaic.version = 11 : i64} {
  func.func @_conv3x3_kernel(%arg0: i32, %arg1: i32, %arg2: memref<1x1x3x3x32xbf16, #tpu.memory_space<vmem>>, %arg3: memref<288x64xbf16, #tpu.memory_space<vmem>>, %arg4: memref<1x64xf32, #tpu.memory_space<vmem>>, %arg5: memref<1x1x1x1x64xbf16, #tpu.memory_space<vmem>>) attributes {dimension_semantics = [#tpu.dimension_semantics<parallel>, #tpu.dimension_semantics<parallel>], iteration_bounds = array<i64: 2, 1>, scalar_prefetch = 0 : i64, scratch_operands = 0 : i64, tpu.core_type = #tpu.core_type<tc>, window_params = [{transform_indices = @transform_0, window_bounds = array<i64: 1, 1, 3, 3, 32>}, {pipeline_mode = #tpu.pipeline_mode<synchronous>, transform_indices = @transform_1, window_bounds = array<i64: 288, 64>}, {pipeline_mode = #tpu.pipeline_mode<synchronous>, transform_indices = @transform_2, window_bounds = array<i64: 1, 64>}, {transform_indices = @transform_3, window_bounds = array<i64: 1, 1, 1, 1, 64>}]} {
    %cst = arith.constant 0.000000e+00 : f32
    %0 = vector.broadcast %cst : f32 to vector<1x64xf32>
    %c0 = arith.constant 0 : index
    %c0_0 = arith.constant 0 : index
    %c0_1 = arith.constant 0 : index
    %c0_2 = arith.constant 0 : index
    %c0_3 = arith.constant 0 : index
    %1 = vector.load %arg2[%c0, %c0_0, %c0_1, %c0_2, %c0_3] : memref<1x1x3x3x32xbf16, #tpu.memory_space<vmem>>, vector<1x1x3x3x32xbf16>
    %2 = vector.shape_cast %1 : vector<1x1x3x3x32xbf16> to vector<3x3x32xbf16>
    %3 = vector.extract_strided_slice %2 {offsets = [0, 0, 0], sizes = [1, 1, 32], strides = [1, 1, 1]} : vector<3x3x32xbf16> to vector<1x1x32xbf16>
    %4 = vector.extract_strided_slice %2 {offsets = [0, 1, 0], sizes = [1, 1, 32], strides = [1, 1, 1]} : vector<3x3x32xbf16> to vector<1x1x32xbf16>
    %5 = vector.extract_strided_slice %2 {offsets = [0, 2, 0], sizes = [1, 1, 32], strides = [1, 1, 1]} : vector<3x3x32xbf16> to vector<1x1x32xbf16>
    %6 = vector.extract_strided_slice %2 {offsets = [1, 0, 0], sizes = [1, 1, 32], strides = [1, 1, 1]} : vector<3x3x32xbf16> to vector<1x1x32xbf16>
    %7 = vector.extract_strided_slice %2 {offsets = [1, 1, 0], sizes = [1, 1, 32], strides = [1, 1, 1]} : vector<3x3x32xbf16> to vector<1x1x32xbf16>
    %8 = vector.extract_strided_slice %2 {offsets = [1, 2, 0], sizes = [1, 1, 32], strides = [1, 1, 1]} : vector<3x3x32xbf16> to vector<1x1x32xbf16>
    %9 = vector.extract_strided_slice %2 {offsets = [2, 0, 0], sizes = [1, 1, 32], strides = [1, 1, 1]} : vector<3x3x32xbf16> to vector<1x1x32xbf16>
    %10 = vector.extract_strided_slice %2 {offsets = [2, 1, 0], sizes = [1, 1, 32], strides = [1, 1, 1]} : vector<3x3x32xbf16> to vector<1x1x32xbf16>
    %11 = vector.extract_strided_slice %2 {offsets = [2, 2, 0], sizes = [1, 1, 32], strides = [1, 1, 1]} : vector<3x3x32xbf16> to vector<1x1x32xbf16>
    %12 = tpu.concatenate %3, %4, %5, %6, %7, %8, %9, %10, %11 in 2 : vector<1x1x32xbf16>, vector<1x1x32xbf16>, vector<1x1x32xbf16>, vector<1x1x32xbf16>, vector<1x1x32xbf16>, vector<1x1x32xbf16>, vector<1x1x32xbf16>, vector<1x1x32xbf16>, vector<1x1x32xbf16> -> vector<1x1x288xbf16>
    %13 = vector.shape_cast %12 : vector<1x1x288xbf16> to vector<1x288xbf16>
    %c0_4 = arith.constant 0 : index
    %c0_5 = arith.constant 0 : index
    %14 = vector.load %arg3[%c0_4, %c0_5] : memref<288x64xbf16, #tpu.memory_space<vmem>>, vector<288x64xbf16>
    %cst_6 = arith.constant dense<0.000000e+00> : vector<1x64xf32>
    %15 = tpu.matmul %13, %14, %cst_6 {dimension_numbers = #tpu.dot_dimension_numbers<[1], [0], [0], [1], [0, 0, 1, 1], [], []>} : vector<1x288xbf16>, vector<288x64xbf16>, vector<1x64xf32> -> vector<1x64xf32>
    %16 = arith.addf %0, %15 : vector<1x64xf32>
    %c0_7 = arith.constant 0 : index
    %c0_8 = arith.constant 0 : index
    %17 = vector.load %arg4[%c0_7, %c0_8] : memref<1x64xf32, #tpu.memory_space<vmem>>, vector<1x64xf32>
    %18 = arith.addf %16, %17 : vector<1x64xf32>
    %cst_9 = arith.constant 0.000000e+00 : f32
    %19 = vector.broadcast %cst_9 : f32 to vector<1x64xf32>
    %20 = arith.maximumf %18, %19 : vector<1x64xf32>
    %21 = vector.shape_cast %20 : vector<1x64xf32> to vector<1x1x64xf32>
    %22 = arith.truncf %21 : vector<1x1x64xf32> to vector<1x1x64xbf16>
    %c0_10 = arith.constant 0 : index
    %c0_11 = arith.constant 0 : index
    %c0_12 = arith.constant 0 : index
    %c0_13 = arith.constant 0 : index
    %c0_14 = arith.constant 0 : index
    %23 = vector.load %arg5[%c0_10, %c0_11, %c0_12, %c0_13, %c0_14] : memref<1x1x1x1x64xbf16, #tpu.memory_space<vmem>>, vector<1x1x1x1x64xbf16>
    %24 = vector.shape_cast %23 : vector<1x1x1x1x64xbf16> to vector<1x1x64xbf16>
    %25 = vector.shape_cast %22 : vector<1x1x64xbf16> to vector<1x1x1x1x64xbf16>
    tpu.vector_store %arg5[%c0_10, %c0_11, %c0_12, %c0_13, %c0_14], %25 {strides = array<i32>} : memref<1x1x1x1x64xbf16, #tpu.memory_space<vmem>>, vector<1x1x1x1x64xbf16>,
    return
  }
  func.func @transform_0(%arg0: i32, %arg1: i32) -> (i32, i32, i32, i32, i32) {
    %c0_i32 = arith.constant 0 : i32
    %c0_i32_0 = arith.constant 0 : i32
    %c0_i32_1 = arith.constant 0 : i32
    %c0_i32_2 = arith.constant 0 : i32
    return %arg0, %arg1, %c0_i32, %c0_i32_0, %c0_i32_1 : i32, i32, i32, i32, i32
  }
  func.func @transform_1(%arg0: i32, %arg1: i32) -> (i32, i32) {
    %c0_i32 = arith.constant 0 : i32
    %c0_i32_0 = arith.constant 0 : i32
    %c0_i32_1 = arith.constant 0 : i32
    return %c0_i32, %c0_i32_0 : i32, i32
  }
  func.func @transform_2(%arg0: i32, %arg1: i32) -> (i32, i32) {
    %c0_i32 = arith.constant 0 : i32
    %c0_i32_0 = arith.constant 0 : i32
    %c0_i32_1 = arith.constant 0 : i32
    return %c0_i32, %c0_i32_0 : i32, i32
  }
  func.func @transform_3(%arg0: i32, %arg1: i32) -> (i32, i32, i32, i32, i32) {
    %c0_i32 = arith.constant 0 : i32
    %c0_i32_0 = arith.constant 0 : i32
    %c0_i32_1 = arith.constant 0 : i32
    %c0_i32_2 = arith.constant 0 : i32
    return %arg0, %arg1, %c0_i32, %c0_i32_0, %c0_i32_1 : i32, i32, i32, i32, i32
  }
}

module attributes {stable_mosaic.version = 11 : i64} {
  func.func @_conv3x3_kernel(%arg0: i32, %arg1: i32, %arg2: memref<1x1x3x3x64xbf16, #tpu.memory_space<vmem>>, %arg3: memref<576x64xbf16, #tpu.memory_space<vmem>>, %arg4: memref<1x64xf32, #tpu.memory_space<vmem>>, %arg5: memref<1x1x1x1x64xbf16, #tpu.memory_space<vmem>>) attributes {dimension_semantics = [#tpu.dimension_semantics<parallel>, #tpu.dimension_semantics<parallel>], iteration_bounds = array<i64: 2, 1>, scalar_prefetch = 0 : i64, scratch_operands = 0 : i64, tpu.core_type = #tpu.core_type<tc>, window_params = [{transform_indices = @transform_0, window_bounds = array<i64: 1, 1, 3, 3, 64>}, {pipeline_mode = #tpu.pipeline_mode<synchronous>, transform_indices = @transform_1, window_bounds = array<i64: 576, 64>}, {pipeline_mode = #tpu.pipeline_mode<synchronous>, transform_indices = @transform_2, window_bounds = array<i64: 1, 64>}, {transform_indices = @transform_3, window_bounds = array<i64: 1, 1, 1, 1, 64>}]} {
    %cst = arith.constant 0.000000e+00 : f32
    %0 = vector.broadcast %cst : f32 to vector<1x64xf32>
    %c0 = arith.constant 0 : index
    %c0_0 = arith.constant 0 : index
    %c0_1 = arith.constant 0 : index
    %c0_2 = arith.constant 0 : index
    %c0_3 = arith.constant 0 : index
    %1 = vector.load %arg2[%c0, %c0_0, %c0_1, %c0_2, %c0_3] : memref<1x1x3x3x64xbf16, #tpu.memory_space<vmem>>, vector<1x1x3x3x64xbf16>
    %2 = vector.shape_cast %1 : vector<1x1x3x3x64xbf16> to vector<3x3x64xbf16>
    %3 = vector.extract_strided_slice %2 {offsets = [0, 0, 0], sizes = [1, 1, 64], strides = [1, 1, 1]} : vector<3x3x64xbf16> to vector<1x1x64xbf16>
    %4 = vector.extract_strided_slice %2 {offsets = [0, 1, 0], sizes = [1, 1, 64], strides = [1, 1, 1]} : vector<3x3x64xbf16> to vector<1x1x64xbf16>
    %5 = vector.extract_strided_slice %2 {offsets = [0, 2, 0], sizes = [1, 1, 64], strides = [1, 1, 1]} : vector<3x3x64xbf16> to vector<1x1x64xbf16>
    %6 = vector.extract_strided_slice %2 {offsets = [1, 0, 0], sizes = [1, 1, 64], strides = [1, 1, 1]} : vector<3x3x64xbf16> to vector<1x1x64xbf16>
    %7 = vector.extract_strided_slice %2 {offsets = [1, 1, 0], sizes = [1, 1, 64], strides = [1, 1, 1]} : vector<3x3x64xbf16> to vector<1x1x64xbf16>
    %8 = vector.extract_strided_slice %2 {offsets = [1, 2, 0], sizes = [1, 1, 64], strides = [1, 1, 1]} : vector<3x3x64xbf16> to vector<1x1x64xbf16>
    %9 = vector.extract_strided_slice %2 {offsets = [2, 0, 0], sizes = [1, 1, 64], strides = [1, 1, 1]} : vector<3x3x64xbf16> to vector<1x1x64xbf16>
    %10 = vector.extract_strided_slice %2 {offsets = [2, 1, 0], sizes = [1, 1, 64], strides = [1, 1, 1]} : vector<3x3x64xbf16> to vector<1x1x64xbf16>
    %11 = vector.extract_strided_slice %2 {offsets = [2, 2, 0], sizes = [1, 1, 64], strides = [1, 1, 1]} : vector<3x3x64xbf16> to vector<1x1x64xbf16>
    %12 = tpu.concatenate %3, %4, %5, %6, %7, %8, %9, %10, %11 in 2 : vector<1x1x64xbf16>, vector<1x1x64xbf16>, vector<1x1x64xbf16>, vector<1x1x64xbf16>, vector<1x1x64xbf16>, vector<1x1x64xbf16>, vector<1x1x64xbf16>, vector<1x1x64xbf16>, vector<1x1x64xbf16> -> vector<1x1x576xbf16>
    %13 = vector.shape_cast %12 : vector<1x1x576xbf16> to vector<1x576xbf16>
    %c0_4 = arith.constant 0 : index
    %c0_5 = arith.constant 0 : index
    %14 = vector.load %arg3[%c0_4, %c0_5] : memref<576x64xbf16, #tpu.memory_space<vmem>>, vector<576x64xbf16>
    %cst_6 = arith.constant dense<0.000000e+00> : vector<1x64xf32>
    %15 = tpu.matmul %13, %14, %cst_6 {dimension_numbers = #tpu.dot_dimension_numbers<[1], [0], [0], [1], [0, 0, 1, 1], [], []>} : vector<1x576xbf16>, vector<576x64xbf16>, vector<1x64xf32> -> vector<1x64xf32>
    %16 = arith.addf %0, %15 : vector<1x64xf32>
    %c0_7 = arith.constant 0 : index
    %c0_8 = arith.constant 0 : index
    %17 = vector.load %arg4[%c0_7, %c0_8] : memref<1x64xf32, #tpu.memory_space<vmem>>, vector<1x64xf32>
    %18 = arith.addf %16, %17 : vector<1x64xf32>
    %cst_9 = arith.constant 0.000000e+00 : f32
    %19 = vector.broadcast %cst_9 : f32 to vector<1x64xf32>
    %20 = arith.maximumf %18, %19 : vector<1x64xf32>
    %21 = vector.shape_cast %20 : vector<1x64xf32> to vector<1x1x64xf32>
    %22 = arith.truncf %21 : vector<1x1x64xf32> to vector<1x1x64xbf16>
    %c0_10 = arith.constant 0 : index
    %c0_11 = arith.constant 0 : index
    %c0_12 = arith.constant 0 : index
    %c0_13 = arith.constant 0 : index
    %c0_14 = arith.constant 0 : index
    %23 = vector.load %arg5[%c0_10, %c0_11, %c0_12, %c0_13, %c0_14] : memref<1x1x1x1x64xbf16, #tpu.memory_space<vmem>>, vector<1x1x1x1x64xbf16>
    %24 = vector.shape_cast %23 : vector<1x1x1x1x64xbf16> to vector<1x1x64xbf16>
    %25 = vector.shape_cast %22 : vector<1x1x64xbf16> to vector<1x1x1x1x64xbf16>
    tpu.vector_store %arg5[%c0_10, %c0_11, %c0_12, %c0_13, %c0_14], %25 {strides = array<i32>} : memref<1x1x1x1x64xbf16, #tpu.memory_space<vmem>>, vector<1x1x1x1x64xbf16>,
    return
  }
  func.func @transform_0(%arg0: i32, %arg1: i32) -> (i32, i32, i32, i32, i32) {
    %c0_i32 = arith.constant 0 : i32
    %c0_i32_0 = arith.constant 0 : i32
    %c0_i32_1 = arith.constant 0 : i32
    %c0_i32_2 = arith.constant 0 : i32
    return %arg0, %arg1, %c0_i32, %c0_i32_0, %c0_i32_1 : i32, i32, i32, i32, i32
  }
  func.func @transform_1(%arg0: i32, %arg1: i32) -> (i32, i32) {
    %c0_i32 = arith.constant 0 : i32
    %c0_i32_0 = arith.constant 0 : i32
    %c0_i32_1 = arith.constant 0 : i32
    return %c0_i32, %c0_i32_0 : i32, i32
  }
  func.func @transform_2(%arg0: i32, %arg1: i32) -> (i32, i32) {
    %c0_i32 = arith.constant 0 : i32
    %c0_i32_0 = arith.constant 0 : i32
    %c0_i32_1 = arith.constant 0 : i32
    return %c0_i32, %c0_i32_0 : i32, i32
  }
  func.func @transform_3(%arg0: i32, %arg1: i32) -> (i32, i32, i32, i32, i32) {
    %c0_i32 = arith.constant 0 : i32
    %c0_i32_0 = arith.constant 0 : i32
    %c0_i32_1 = arith.constant 0 : i32
    %c0_i32_2 = arith.constant 0 : i32
    return %arg0, %arg1, %c0_i32, %c0_i32_0, %c0_i32_1 : i32, i32, i32, i32, i32
  }
}

module attributes {stable_mosaic.version = 11 : i64} {
  func.func @_deconv2x2_kernel(%arg0: i32, %arg1: memref<2x64xbf16, #tpu.memory_space<vmem>>, %arg2: memref<64x128xbf16, #tpu.memory_space<vmem>>, %arg3: memref<1x128xf32, #tpu.memory_space<vmem>>, %arg4: memref<2x128xbf16, #tpu.memory_space<vmem>>) attributes {dimension_semantics = [#tpu.dimension_semantics<parallel>], iteration_bounds = array<i64: 1>, scalar_prefetch = 0 : i64, scratch_operands = 0 : i64, tpu.core_type = #tpu.core_type<tc>, window_params = [{transform_indices = @transform_0, window_bounds = array<i64: 2, 64>}, {pipeline_mode = #tpu.pipeline_mode<synchronous>, transform_indices = @transform_1, window_bounds = array<i64: 64, 128>}, {pipeline_mode = #tpu.pipeline_mode<synchronous>, transform_indices = @transform_2, window_bounds = array<i64: 1, 128>}, {transform_indices = @transform_3, window_bounds = array<i64: 2, 128>}]} {
    %c0 = arith.constant 0 : index
    %c0_0 = arith.constant 0 : index
    %0 = vector.load %arg1[%c0, %c0_0] : memref<2x64xbf16, #tpu.memory_space<vmem>>, vector<2x64xbf16>
    %c0_1 = arith.constant 0 : index
    %c0_2 = arith.constant 0 : index
    %1 = vector.load %arg2[%c0_1, %c0_2] : memref<64x128xbf16, #tpu.memory_space<vmem>>, vector<64x128xbf16>
    %cst = arith.constant dense<0.000000e+00> : vector<2x128xf32>
    %2 = tpu.matmul %0, %1, %cst {dimension_numbers = #tpu.dot_dimension_numbers<[1], [0], [0], [1], [0, 0, 1, 1], [], []>} : vector<2x64xbf16>, vector<64x128xbf16>, vector<2x128xf32> -> vector<2x128xf32>
    %c0_3 = arith.constant 0 : index
    %c0_4 = arith.constant 0 : index
    %3 = vector.load %arg3[%c0_3, %c0_4] : memref<1x128xf32, #tpu.memory_space<vmem>>, vector<1x128xf32>
    %4 = vector.broadcast %3 : vector<1x128xf32> to vector<2x128xf32>
    %5 = arith.addf %2, %4 : vector<2x128xf32>
    %6 = arith.truncf %5 : vector<2x128xf32> to vector<2x128xbf16>
    %c0_5 = arith.constant 0 : index
    %c0_6 = arith.constant 0 : index
    %7 = vector.load %arg4[%c0_5, %c0_6] : memref<2x128xbf16, #tpu.memory_space<vmem>>, vector<2x128xbf16>
    tpu.vector_store %arg4[%c0_5, %c0_6], %6 {strides = array<i32>} : memref<2x128xbf16, #tpu.memory_space<vmem>>, vector<2x128xbf16>,
    return
  }
  func.func @transform_0(%arg0: i32) -> (i32, i32) {
    %c0_i32 = arith.constant 0 : i32
    %c0_i32_0 = arith.constant 0 : i32
    return %arg0, %c0_i32 : i32, i32
  }
  func.func @transform_1(%arg0: i32) -> (i32, i32) {
    %c0_i32 = arith.constant 0 : i32
    %c0_i32_0 = arith.constant 0 : i32
    %c0_i32_1 = arith.constant 0 : i32
    return %c0_i32, %c0_i32_0 : i32, i32
  }
  func.func @transform_2(%arg0: i32) -> (i32, i32) {
    %c0_i32 = arith.constant 0 : i32
    %c0_i32_0 = arith.constant 0 : i32
    %c0_i32_1 = arith.constant 0 : i32
    return %c0_i32, %c0_i32_0 : i32, i32
  }
  func.func @transform_3(%arg0: i32) -> (i32, i32) {
    %c0_i32 = arith.constant 0 : i32
    %c0_i32_0 = arith.constant 0 : i32
    return %arg0, %c0_i32 : i32, i32
  }
}

module attributes {stable_mosaic.version = 11 : i64} {
  func.func @_conv3x3_kernel(%arg0: i32, %arg1: i32, %arg2: memref<1x1x4x4x32xbf16, #tpu.memory_space<vmem>>, %arg3: memref<1x1x4x4x32xbf16, #tpu.memory_space<vmem>>, %arg4: memref<288x32xbf16, #tpu.memory_space<vmem>>, %arg5: memref<288x32xbf16, #tpu.memory_space<vmem>>, %arg6: memref<1x32xf32, #tpu.memory_space<vmem>>, %arg7: memref<1x1x2x2x32xbf16, #tpu.memory_space<vmem>>) attributes {dimension_semantics = [#tpu.dimension_semantics<parallel>, #tpu.dimension_semantics<parallel>], iteration_bounds = array<i64: 2, 1>, scalar_prefetch = 0 : i64, scratch_operands = 0 : i64, tpu.core_type = #tpu.core_type<tc>, window_params = [{transform_indices = @transform_0, window_bounds = array<i64: 1, 1, 4, 4, 32>}, {transform_indices = @transform_1, window_bounds = array<i64: 1, 1, 4, 4, 32>}, {pipeline_mode = #tpu.pipeline_mode<synchronous>, transform_indices = @transform_2, window_bounds = array<i64: 288, 32>}, {pipeline_mode = #tpu.pipeline_mode<synchronous>, transform_indices = @transform_3, window_bounds = array<i64: 288, 32>}, {pipeline_mode = #tpu.pipeline_mode<synchronous>, transform_indices = @transform_4, window_bounds = array<i64: 1, 32>}, {transform_indices = @transform_5, window_bounds = array<i64: 1, 1, 2, 2, 32>}]} {
    %cst = arith.constant 0.000000e+00 : f32
    %0 = vector.broadcast %cst : f32 to vector<4x32xf32>
    %c0 = arith.constant 0 : index
    %c0_0 = arith.constant 0 : index
    %c0_1 = arith.constant 0 : index
    %c0_2 = arith.constant 0 : index
    %c0_3 = arith.constant 0 : index
    %1 = vector.load %arg2[%c0, %c0_0, %c0_1, %c0_2, %c0_3] : memref<1x1x4x4x32xbf16, #tpu.memory_space<vmem>>, vector<1x1x4x4x32xbf16>
    %2 = vector.shape_cast %1 : vector<1x1x4x4x32xbf16> to vector<4x4x32xbf16>
    %3 = vector.extract_strided_slice %2 {offsets = [0, 0, 0], sizes = [2, 2, 32], strides = [1, 1, 1]} : vector<4x4x32xbf16> to vector<2x2x32xbf16>
    %4 = vector.extract_strided_slice %2 {offsets = [0, 1, 0], sizes = [2, 2, 32], strides = [1, 1, 1]} : vector<4x4x32xbf16> to vector<2x2x32xbf16>
    %5 = vector.extract_strided_slice %2 {offsets = [0, 2, 0], sizes = [2, 2, 32], strides = [1, 1, 1]} : vector<4x4x32xbf16> to vector<2x2x32xbf16>
    %6 = vector.extract_strided_slice %2 {offsets = [1, 0, 0], sizes = [2, 2, 32], strides = [1, 1, 1]} : vector<4x4x32xbf16> to vector<2x2x32xbf16>
    %7 = vector.extract_strided_slice %2 {offsets = [1, 1, 0], sizes = [2, 2, 32], strides = [1, 1, 1]} : vector<4x4x32xbf16> to vector<2x2x32xbf16>
    %8 = vector.extract_strided_slice %2 {offsets = [1, 2, 0], sizes = [2, 2, 32], strides = [1, 1, 1]} : vector<4x4x32xbf16> to vector<2x2x32xbf16>
    %9 = vector.extract_strided_slice %2 {offsets = [2, 0, 0], sizes = [2, 2, 32], strides = [1, 1, 1]} : vector<4x4x32xbf16> to vector<2x2x32xbf16>
    %10 = vector.extract_strided_slice %2 {offsets = [2, 1, 0], sizes = [2, 2, 32], strides = [1, 1, 1]} : vector<4x4x32xbf16> to vector<2x2x32xbf16>
    %11 = vector.extract_strided_slice %2 {offsets = [2, 2, 0], sizes = [2, 2, 32], strides = [1, 1, 1]} : vector<4x4x32xbf16> to vector<2x2x32xbf16>
    %12 = tpu.concatenate %3, %4, %5, %6, %7, %8, %9, %10, %11 in 2 : vector<2x2x32xbf16>, vector<2x2x32xbf16>, vector<2x2x32xbf16>, vector<2x2x32xbf16>, vector<2x2x32xbf16>, vector<2x2x32xbf16>, vector<2x2x32xbf16>, vector<2x2x32xbf16>, vector<2x2x32xbf16> -> vector<2x2x288xbf16>
    %13 = vector.shape_cast %12 : vector<2x2x288xbf16> to vector<4x288xbf16>
    %c0_4 = arith.constant 0 : index
    %c0_5 = arith.constant 0 : index
    %14 = vector.load %arg4[%c0_4, %c0_5] : memref<288x32xbf16, #tpu.memory_space<vmem>>, vector<288x32xbf16>
    %cst_6 = arith.constant dense<0.000000e+00> : vector<4x32xf32>
    %15 = tpu.matmul %13, %14, %cst_6 {dimension_numbers = #tpu.dot_dimension_numbers<[1], [0], [0], [1], [0, 0, 1, 1], [], []>} : vector<4x288xbf16>, vector<288x32xbf16>, vector<4x32xf32> -> vector<4x32xf32>
    %16 = arith.addf %0, %15 : vector<4x32xf32>
    %c0_7 = arith.constant 0 : index
    %c0_8 = arith.constant 0 : index
    %c0_9 = arith.constant 0 : index
    %c0_10 = arith.constant 0 : index
    %c0_11 = arith.constant 0 : index
    %17 = vector.load %arg3[%c0_7, %c0_8, %c0_9, %c0_10, %c0_11] : memref<1x1x4x4x32xbf16, #tpu.memory_space<vmem>>, vector<1x1x4x4x32xbf16>
    %18 = vector.shape_cast %17 : vector<1x1x4x4x32xbf16> to vector<4x4x32xbf16>
    %19 = vector.extract_strided_slice %18 {offsets = [0, 0, 0], sizes = [2, 2, 32], strides = [1, 1, 1]} : vector<4x4x32xbf16> to vector<2x2x32xbf16>
    %20 = vector.extract_strided_slice %18 {offsets = [0, 1, 0], sizes = [2, 2, 32], strides = [1, 1, 1]} : vector<4x4x32xbf16> to vector<2x2x32xbf16>
    %21 = vector.extract_strided_slice %18 {offsets = [0, 2, 0], sizes = [2, 2, 32], strides = [1, 1, 1]} : vector<4x4x32xbf16> to vector<2x2x32xbf16>
    %22 = vector.extract_strided_slice %18 {offsets = [1, 0, 0], sizes = [2, 2, 32], strides = [1, 1, 1]} : vector<4x4x32xbf16> to vector<2x2x32xbf16>
    %23 = vector.extract_strided_slice %18 {offsets = [1, 1, 0], sizes = [2, 2, 32], strides = [1, 1, 1]} : vector<4x4x32xbf16> to vector<2x2x32xbf16>
    %24 = vector.extract_strided_slice %18 {offsets = [1, 2, 0], sizes = [2, 2, 32], strides = [1, 1, 1]} : vector<4x4x32xbf16> to vector<2x2x32xbf16>
    %25 = vector.extract_strided_slice %18 {offsets = [2, 0, 0], sizes = [2, 2, 32], strides = [1, 1, 1]} : vector<4x4x32xbf16> to vector<2x2x32xbf16>
    %26 = vector.extract_strided_slice %18 {offsets = [2, 1, 0], sizes = [2, 2, 32], strides = [1, 1, 1]} : vector<4x4x32xbf16> to vector<2x2x32xbf16>
    %27 = vector.extract_strided_slice %18 {offsets = [2, 2, 0], sizes = [2, 2, 32], strides = [1, 1, 1]} : vector<4x4x32xbf16> to vector<2x2x32xbf16>
    %28 = tpu.concatenate %19, %20, %21, %22, %23, %24, %25, %26, %27 in 2 : vector<2x2x32xbf16>, vector<2x2x32xbf16>, vector<2x2x32xbf16>, vector<2x2x32xbf16>, vector<2x2x32xbf16>, vector<2x2x32xbf16>, vector<2x2x32xbf16>, vector<2x2x32xbf16>, vector<2x2x32xbf16> -> vector<2x2x288xbf16>
    %29 = vector.shape_cast %28 : vector<2x2x288xbf16> to vector<4x288xbf16>
    %c0_12 = arith.constant 0 : index
    %c0_13 = arith.constant 0 : index
    %30 = vector.load %arg5[%c0_12, %c0_13] : memref<288x32xbf16, #tpu.memory_space<vmem>>, vector<288x32xbf16>
    %cst_14 = arith.constant dense<0.000000e+00> : vector<4x32xf32>
    %31 = tpu.matmul %29, %30, %cst_14 {dimension_numbers = #tpu.dot_dimension_numbers<[1], [0], [0], [1], [0, 0, 1, 1], [], []>} : vector<4x288xbf16>, vector<288x32xbf16>, vector<4x32xf32> -> vector<4x32xf32>
    %32 = arith.addf %16, %31 : vector<4x32xf32>
    %c0_15 = arith.constant 0 : index
    %c0_16 = arith.constant 0 : index
    %33 = vector.load %arg6[%c0_15, %c0_16] : memref<1x32xf32, #tpu.memory_space<vmem>>, vector<1x32xf32>
    %34 = vector.broadcast %33 : vector<1x32xf32> to vector<4x32xf32>
    %35 = arith.addf %32, %34 : vector<4x32xf32>
    %cst_17 = arith.constant 0.000000e+00 : f32
    %36 = vector.broadcast %cst_17 : f32 to vector<4x32xf32>
    %37 = arith.maximumf %35, %36 : vector<4x32xf32>
    %38 = vector.shape_cast %37 : vector<4x32xf32> to vector<2x2x32xf32>
    %39 = arith.truncf %38 : vector<2x2x32xf32> to vector<2x2x32xbf16>
    %c0_18 = arith.constant 0 : index
    %c0_19 = arith.constant 0 : index
    %c0_20 = arith.constant 0 : index
    %c0_21 = arith.constant 0 : index
    %c0_22 = arith.constant 0 : index
    %40 = vector.load %arg7[%c0_18, %c0_19, %c0_20, %c0_21, %c0_22] : memref<1x1x2x2x32xbf16, #tpu.memory_space<vmem>>, vector<1x1x2x2x32xbf16>
    %41 = vector.shape_cast %40 : vector<1x1x2x2x32xbf16> to vector<2x2x32xbf16>
    %42 = vector.shape_cast %39 : vector<2x2x32xbf16> to vector<1x1x2x2x32xbf16>
    tpu.vector_store %arg7[%c0_18, %c0_19, %c0_20, %c0_21, %c0_22], %42 {strides = array<i32>} : memref<1x1x2x2x32xbf16, #tpu.memory_space<vmem>>, vector<1x1x2x2x32xbf16>,
    return
  }
  func.func @transform_0(%arg0: i32, %arg1: i32) -> (i32, i32, i32, i32, i32) {
    %c0_i32 = arith.constant 0 : i32
    %c0_i32_0 = arith.constant 0 : i32
    %c0_i32_1 = arith.constant 0 : i32
    %c0_i32_2 = arith.constant 0 : i32
    return %arg0, %arg1, %c0_i32, %c0_i32_0, %c0_i32_1 : i32, i32, i32, i32, i32
  }
  func.func @transform_1(%arg0: i32, %arg1: i32) -> (i32, i32, i32, i32, i32) {
    %c0_i32 = arith.constant 0 : i32
    %c0_i32_0 = arith.constant 0 : i32
    %c0_i32_1 = arith.constant 0 : i32
    %c0_i32_2 = arith.constant 0 : i32
    return %arg0, %arg1, %c0_i32, %c0_i32_0, %c0_i32_1 : i32, i32, i32, i32, i32
  }
  func.func @transform_2(%arg0: i32, %arg1: i32) -> (i32, i32) {
    %c0_i32 = arith.constant 0 : i32
    %c0_i32_0 = arith.constant 0 : i32
    %c0_i32_1 = arith.constant 0 : i32
    return %c0_i32, %c0_i32_0 : i32, i32
  }
  func.func @transform_3(%arg0: i32, %arg1: i32) -> (i32, i32) {
    %c0_i32 = arith.constant 0 : i32
    %c0_i32_0 = arith.constant 0 : i32
    %c0_i32_1 = arith.constant 0 : i32
    return %c0_i32, %c0_i32_0 : i32, i32
  }
  func.func @transform_4(%arg0: i32, %arg1: i32) -> (i32, i32) {
    %c0_i32 = arith.constant 0 : i32
    %c0_i32_0 = arith.constant 0 : i32
    %c0_i32_1 = arith.constant 0 : i32
    return %c0_i32, %c0_i32_0 : i32, i32
  }
  func.func @transform_5(%arg0: i32, %arg1: i32) -> (i32, i32, i32, i32, i32) {
    %c0_i32 = arith.constant 0 : i32
    %c0_i32_0 = arith.constant 0 : i32
    %c0_i32_1 = arith.constant 0 : i32
    %c0_i32_2 = arith.constant 0 : i32
    return %arg0, %arg1, %c0_i32, %c0_i32_0, %c0_i32_1 : i32, i32, i32, i32, i32
  }
}

module attributes {stable_mosaic.version = 11 : i64} {
  func.func @_deconv2x2_kernel(%arg0: i32, %arg1: memref<8x32xbf16, #tpu.memory_space<vmem>>, %arg2: memref<32x64xbf16, #tpu.memory_space<vmem>>, %arg3: memref<1x64xf32, #tpu.memory_space<vmem>>, %arg4: memref<8x64xbf16, #tpu.memory_space<vmem>>) attributes {dimension_semantics = [#tpu.dimension_semantics<parallel>], iteration_bounds = array<i64: 1>, scalar_prefetch = 0 : i64, scratch_operands = 0 : i64, tpu.core_type = #tpu.core_type<tc>, window_params = [{transform_indices = @transform_0, window_bounds = array<i64: 8, 32>}, {pipeline_mode = #tpu.pipeline_mode<synchronous>, transform_indices = @transform_1, window_bounds = array<i64: 32, 64>}, {pipeline_mode = #tpu.pipeline_mode<synchronous>, transform_indices = @transform_2, window_bounds = array<i64: 1, 64>}, {transform_indices = @transform_3, window_bounds = array<i64: 8, 64>}]} {
    %c0 = arith.constant 0 : index
    %c0_0 = arith.constant 0 : index
    %0 = vector.load %arg1[%c0, %c0_0] : memref<8x32xbf16, #tpu.memory_space<vmem>>, vector<8x32xbf16>
    %c0_1 = arith.constant 0 : index
    %c0_2 = arith.constant 0 : index
    %1 = vector.load %arg2[%c0_1, %c0_2] : memref<32x64xbf16, #tpu.memory_space<vmem>>, vector<32x64xbf16>
    %cst = arith.constant dense<0.000000e+00> : vector<8x64xf32>
    %2 = tpu.matmul %0, %1, %cst {dimension_numbers = #tpu.dot_dimension_numbers<[1], [0], [0], [1], [0, 0, 1, 1], [], []>} : vector<8x32xbf16>, vector<32x64xbf16>, vector<8x64xf32> -> vector<8x64xf32>
    %c0_3 = arith.constant 0 : index
    %c0_4 = arith.constant 0 : index
    %3 = vector.load %arg3[%c0_3, %c0_4] : memref<1x64xf32, #tpu.memory_space<vmem>>, vector<1x64xf32>
    %4 = vector.broadcast %3 : vector<1x64xf32> to vector<8x64xf32>
    %5 = arith.addf %2, %4 : vector<8x64xf32>
    %6 = arith.truncf %5 : vector<8x64xf32> to vector<8x64xbf16>
    %c0_5 = arith.constant 0 : index
    %c0_6 = arith.constant 0 : index
    %7 = vector.load %arg4[%c0_5, %c0_6] : memref<8x64xbf16, #tpu.memory_space<vmem>>, vector<8x64xbf16>
    tpu.vector_store %arg4[%c0_5, %c0_6], %6 {strides = array<i32>} : memref<8x64xbf16, #tpu.memory_space<vmem>>, vector<8x64xbf16>,
    return
  }
  func.func @transform_0(%arg0: i32) -> (i32, i32) {
    %c0_i32 = arith.constant 0 : i32
    %c0_i32_0 = arith.constant 0 : i32
    return %arg0, %c0_i32 : i32, i32
  }
  func.func @transform_1(%arg0: i32) -> (i32, i32) {
    %c0_i32 = arith.constant 0 : i32
    %c0_i32_0 = arith.constant 0 : i32
    %c0_i32_1 = arith.constant 0 : i32
    return %c0_i32, %c0_i32_0 : i32, i32
  }
  func.func @transform_2(%arg0: i32) -> (i32, i32) {
    %c0_i32 = arith.constant 0 : i32
    %c0_i32_0 = arith.constant 0 : i32
    %c0_i32_1 = arith.constant 0 : i32
    return %c0_i32, %c0_i32_0 : i32, i32
  }
  func.func @transform_3(%arg0: i32) -> (i32, i32) {
    %c0_i32 = arith.constant 0 : i32
    %c0_i32_0 = arith.constant 0 : i32
    return %arg0, %c0_i32 : i32, i32
  }
}

module attributes {stable_mosaic.version = 11 : i64} {
  func.func @_conv3x3_kernel(%arg0: i32, %arg1: i32, %arg2: memref<1x1x6x6x16xbf16, #tpu.memory_space<vmem>>, %arg3: memref<1x1x6x6x16xbf16, #tpu.memory_space<vmem>>, %arg4: memref<144x16xbf16, #tpu.memory_space<vmem>>, %arg5: memref<144x16xbf16, #tpu.memory_space<vmem>>, %arg6: memref<1x16xf32, #tpu.memory_space<vmem>>, %arg7: memref<1x1x4x4x16xbf16, #tpu.memory_space<vmem>>) attributes {dimension_semantics = [#tpu.dimension_semantics<parallel>, #tpu.dimension_semantics<parallel>], iteration_bounds = array<i64: 2, 1>, scalar_prefetch = 0 : i64, scratch_operands = 0 : i64, tpu.core_type = #tpu.core_type<tc>, window_params = [{transform_indices = @transform_0, window_bounds = array<i64: 1, 1, 6, 6, 16>}, {transform_indices = @transform_1, window_bounds = array<i64: 1, 1, 6, 6, 16>}, {pipeline_mode = #tpu.pipeline_mode<synchronous>, transform_indices = @transform_2, window_bounds = array<i64: 144, 16>}, {pipeline_mode = #tpu.pipeline_mode<synchronous>, transform_indices = @transform_3, window_bounds = array<i64: 144, 16>}, {pipeline_mode = #tpu.pipeline_mode<synchronous>, transform_indices = @transform_4, window_bounds = array<i64: 1, 16>}, {transform_indices = @transform_5, window_bounds = array<i64: 1, 1, 4, 4, 16>}]} {
    %cst = arith.constant 0.000000e+00 : f32
    %0 = vector.broadcast %cst : f32 to vector<16x16xf32>
    %c0 = arith.constant 0 : index
    %c0_0 = arith.constant 0 : index
    %c0_1 = arith.constant 0 : index
    %c0_2 = arith.constant 0 : index
    %c0_3 = arith.constant 0 : index
    %1 = vector.load %arg2[%c0, %c0_0, %c0_1, %c0_2, %c0_3] : memref<1x1x6x6x16xbf16, #tpu.memory_space<vmem>>, vector<1x1x6x6x16xbf16>
    %2 = vector.shape_cast %1 : vector<1x1x6x6x16xbf16> to vector<6x6x16xbf16>
    %3 = vector.extract_strided_slice %2 {offsets = [0, 0, 0], sizes = [4, 4, 16], strides = [1, 1, 1]} : vector<6x6x16xbf16> to vector<4x4x16xbf16>
    %4 = vector.extract_strided_slice %2 {offsets = [0, 1, 0], sizes = [4, 4, 16], strides = [1, 1, 1]} : vector<6x6x16xbf16> to vector<4x4x16xbf16>
    %5 = vector.extract_strided_slice %2 {offsets = [0, 2, 0], sizes = [4, 4, 16], strides = [1, 1, 1]} : vector<6x6x16xbf16> to vector<4x4x16xbf16>
    %6 = vector.extract_strided_slice %2 {offsets = [1, 0, 0], sizes = [4, 4, 16], strides = [1, 1, 1]} : vector<6x6x16xbf16> to vector<4x4x16xbf16>
    %7 = vector.extract_strided_slice %2 {offsets = [1, 1, 0], sizes = [4, 4, 16], strides = [1, 1, 1]} : vector<6x6x16xbf16> to vector<4x4x16xbf16>
    %8 = vector.extract_strided_slice %2 {offsets = [1, 2, 0], sizes = [4, 4, 16], strides = [1, 1, 1]} : vector<6x6x16xbf16> to vector<4x4x16xbf16>
    %9 = vector.extract_strided_slice %2 {offsets = [2, 0, 0], sizes = [4, 4, 16], strides = [1, 1, 1]} : vector<6x6x16xbf16> to vector<4x4x16xbf16>
    %10 = vector.extract_strided_slice %2 {offsets = [2, 1, 0], sizes = [4, 4, 16], strides = [1, 1, 1]} : vector<6x6x16xbf16> to vector<4x4x16xbf16>
    %11 = vector.extract_strided_slice %2 {offsets = [2, 2, 0], sizes = [4, 4, 16], strides = [1, 1, 1]} : vector<6x6x16xbf16> to vector<4x4x16xbf16>
    %12 = tpu.concatenate %3, %4, %5, %6, %7, %8, %9, %10, %11 in 2 : vector<4x4x16xbf16>, vector<4x4x16xbf16>, vector<4x4x16xbf16>, vector<4x4x16xbf16>, vector<4x4x16xbf16>, vector<4x4x16xbf16>, vector<4x4x16xbf16>, vector<4x4x16xbf16>, vector<4x4x16xbf16> -> vector<4x4x144xbf16>
    %13 = vector.shape_cast %12 : vector<4x4x144xbf16> to vector<16x144xbf16>
    %c0_4 = arith.constant 0 : index
    %c0_5 = arith.constant 0 : index
    %14 = vector.load %arg4[%c0_4, %c0_5] : memref<144x16xbf16, #tpu.memory_space<vmem>>, vector<144x16xbf16>
    %cst_6 = arith.constant dense<0.000000e+00> : vector<16x16xf32>
    %15 = tpu.matmul %13, %14, %cst_6 {dimension_numbers = #tpu.dot_dimension_numbers<[1], [0], [0], [1], [0, 0, 1, 1], [], []>} : vector<16x144xbf16>, vector<144x16xbf16>, vector<16x16xf32> -> vector<16x16xf32>
    %16 = arith.addf %0, %15 : vector<16x16xf32>
    %c0_7 = arith.constant 0 : index
    %c0_8 = arith.constant 0 : index
    %c0_9 = arith.constant 0 : index
    %c0_10 = arith.constant 0 : index
    %c0_11 = arith.constant 0 : index
    %17 = vector.load %arg3[%c0_7, %c0_8, %c0_9, %c0_10, %c0_11] : memref<1x1x6x6x16xbf16, #tpu.memory_space<vmem>>, vector<1x1x6x6x16xbf16>
    %18 = vector.shape_cast %17 : vector<1x1x6x6x16xbf16> to vector<6x6x16xbf16>
    %19 = vector.extract_strided_slice %18 {offsets = [0, 0, 0], sizes = [4, 4, 16], strides = [1, 1, 1]} : vector<6x6x16xbf16> to vector<4x4x16xbf16>
    %20 = vector.extract_strided_slice %18 {offsets = [0, 1, 0], sizes = [4, 4, 16], strides = [1, 1, 1]} : vector<6x6x16xbf16> to vector<4x4x16xbf16>
    %21 = vector.extract_strided_slice %18 {offsets = [0, 2, 0], sizes = [4, 4, 16], strides = [1, 1, 1]} : vector<6x6x16xbf16> to vector<4x4x16xbf16>
    %22 = vector.extract_strided_slice %18 {offsets = [1, 0, 0], sizes = [4, 4, 16], strides = [1, 1, 1]} : vector<6x6x16xbf16> to vector<4x4x16xbf16>
    %23 = vector.extract_strided_slice %18 {offsets = [1, 1, 0], sizes = [4, 4, 16], strides = [1, 1, 1]} : vector<6x6x16xbf16> to vector<4x4x16xbf16>
    %24 = vector.extract_strided_slice %18 {offsets = [1, 2, 0], sizes = [4, 4, 16], strides = [1, 1, 1]} : vector<6x6x16xbf16> to vector<4x4x16xbf16>
    %25 = vector.extract_strided_slice %18 {offsets = [2, 0, 0], sizes = [4, 4, 16], strides = [1, 1, 1]} : vector<6x6x16xbf16> to vector<4x4x16xbf16>
    %26 = vector.extract_strided_slice %18 {offsets = [2, 1, 0], sizes = [4, 4, 16], strides = [1, 1, 1]} : vector<6x6x16xbf16> to vector<4x4x16xbf16>
    %27 = vector.extract_strided_slice %18 {offsets = [2, 2, 0], sizes = [4, 4, 16], strides = [1, 1, 1]} : vector<6x6x16xbf16> to vector<4x4x16xbf16>
    %28 = tpu.concatenate %19, %20, %21, %22, %23, %24, %25, %26, %27 in 2 : vector<4x4x16xbf16>, vector<4x4x16xbf16>, vector<4x4x16xbf16>, vector<4x4x16xbf16>, vector<4x4x16xbf16>, vector<4x4x16xbf16>, vector<4x4x16xbf16>, vector<4x4x16xbf16>, vector<4x4x16xbf16> -> vector<4x4x144xbf16>
    %29 = vector.shape_cast %28 : vector<4x4x144xbf16> to vector<16x144xbf16>
    %c0_12 = arith.constant 0 : index
    %c0_13 = arith.constant 0 : index
    %30 = vector.load %arg5[%c0_12, %c0_13] : memref<144x16xbf16, #tpu.memory_space<vmem>>, vector<144x16xbf16>
    %cst_14 = arith.constant dense<0.000000e+00> : vector<16x16xf32>
    %31 = tpu.matmul %29, %30, %cst_14 {dimension_numbers = #tpu.dot_dimension_numbers<[1], [0], [0], [1], [0, 0, 1, 1], [], []>} : vector<16x144xbf16>, vector<144x16xbf16>, vector<16x16xf32> -> vector<16x16xf32>
    %32 = arith.addf %16, %31 : vector<16x16xf32>
    %c0_15 = arith.constant 0 : index
    %c0_16 = arith.constant 0 : index
    %33 = vector.load %arg6[%c0_15, %c0_16] : memref<1x16xf32, #tpu.memory_space<vmem>>, vector<1x16xf32>
    %34 = vector.broadcast %33 : vector<1x16xf32> to vector<16x16xf32>
    %35 = arith.addf %32, %34 : vector<16x16xf32>
    %cst_17 = arith.constant 0.000000e+00 : f32
    %36 = vector.broadcast %cst_17 : f32 to vector<16x16xf32>
    %37 = arith.maximumf %35, %36 : vector<16x16xf32>
    %38 = vector.shape_cast %37 : vector<16x16xf32> to vector<4x4x16xf32>
    %39 = arith.truncf %38 : vector<4x4x16xf32> to vector<4x4x16xbf16>
    %c0_18 = arith.constant 0 : index
    %c0_19 = arith.constant 0 : index
    %c0_20 = arith.constant 0 : index
    %c0_21 = arith.constant 0 : index
    %c0_22 = arith.constant 0 : index
    %40 = vector.load %arg7[%c0_18, %c0_19, %c0_20, %c0_21, %c0_22] : memref<1x1x4x4x16xbf16, #tpu.memory_space<vmem>>, vector<1x1x4x4x16xbf16>
    %41 = vector.shape_cast %40 : vector<1x1x4x4x16xbf16> to vector<4x4x16xbf16>
    %42 = vector.shape_cast %39 : vector<4x4x16xbf16> to vector<1x1x4x4x16xbf16>
    tpu.vector_store %arg7[%c0_18, %c0_19, %c0_20, %c0_21, %c0_22], %42 {strides = array<i32>} : memref<1x1x4x4x16xbf16, #tpu.memory_space<vmem>>, vector<1x1x4x4x16xbf16>,
    return
  }
  func.func @transform_0(%arg0: i32, %arg1: i32) -> (i32, i32, i32, i32, i32) {
    %c0_i32 = arith.constant 0 : i32
    %c0_i32_0 = arith.constant 0 : i32
    %c0_i32_1 = arith.constant 0 : i32
    %c0_i32_2 = arith.constant 0 : i32
    return %arg0, %arg1, %c0_i32, %c0_i32_0, %c0_i32_1 : i32, i32, i32, i32, i32
  }
  func.func @transform_1(%arg0: i32, %arg1: i32) -> (i32, i32, i32, i32, i32) {
    %c0_i32 = arith.constant 0 : i32
    %c0_i32_0 = arith.constant 0 : i32
    %c0_i32_1 = arith.constant 0 : i32
    %c0_i32_2 = arith.constant 0 : i32
    return %arg0, %arg1, %c0_i32, %c0_i32_0, %c0_i32_1 : i32, i32, i32, i32, i32
  }
  func.func @transform_2(%arg0: i32, %arg1: i32) -> (i32, i32) {
    %c0_i32 = arith.constant 0 : i32
    %c0_i32_0 = arith.constant 0 : i32
    %c0_i32_1 = arith.constant 0 : i32
    return %c0_i32, %c0_i32_0 : i32, i32
  }
  func.func @transform_3(%arg0: i32, %arg1: i32) -> (i32, i32) {
    %c0_i32 = arith.constant 0 : i32
    %c0_i32_0 = arith.constant 0 : i32
    %c0_i32_1 = arith.constant 0 : i32
    return %c0_i32, %c0_i32_0 : i32, i32
  }
  func.func @transform_4(%arg0: i32, %arg1: i32) -> (i32, i32) {
    %c0_i32 = arith.constant 0 : i32
    %c0_i32_0 = arith.constant 0 : i32
    %c0_i32_1 = arith.constant 0 : i32
    return %c0_i32, %c0_i32_0 : i32, i32
  }
  func.func @transform_5(%arg0: i32, %arg1: i32) -> (i32, i32, i32, i32, i32) {
    %c0_i32 = arith.constant 0 : i32
    %c0_i32_0 = arith.constant 0 : i32
    %c0_i32_1 = arith.constant 0 : i32
    %c0_i32_2 = arith.constant 0 : i32
    return %arg0, %arg1, %c0_i32, %c0_i32_0, %c0_i32_1 : i32, i32, i32, i32, i32
  }
}

module attributes {stable_mosaic.version = 11 : i64} {
  func.func @_deconv2x2_kernel(%arg0: i32, %arg1: memref<32x16xbf16, #tpu.memory_space<vmem>>, %arg2: memref<16x32xbf16, #tpu.memory_space<vmem>>, %arg3: memref<1x32xf32, #tpu.memory_space<vmem>>, %arg4: memref<32x32xbf16, #tpu.memory_space<vmem>>) attributes {dimension_semantics = [#tpu.dimension_semantics<parallel>], iteration_bounds = array<i64: 1>, scalar_prefetch = 0 : i64, scratch_operands = 0 : i64, tpu.core_type = #tpu.core_type<tc>, window_params = [{transform_indices = @transform_0, window_bounds = array<i64: 32, 16>}, {pipeline_mode = #tpu.pipeline_mode<synchronous>, transform_indices = @transform_1, window_bounds = array<i64: 16, 32>}, {pipeline_mode = #tpu.pipeline_mode<synchronous>, transform_indices = @transform_2, window_bounds = array<i64: 1, 32>}, {transform_indices = @transform_3, window_bounds = array<i64: 32, 32>}]} {
    %c0 = arith.constant 0 : index
    %c0_0 = arith.constant 0 : index
    %0 = vector.load %arg1[%c0, %c0_0] : memref<32x16xbf16, #tpu.memory_space<vmem>>, vector<32x16xbf16>
    %c0_1 = arith.constant 0 : index
    %c0_2 = arith.constant 0 : index
    %1 = vector.load %arg2[%c0_1, %c0_2] : memref<16x32xbf16, #tpu.memory_space<vmem>>, vector<16x32xbf16>
    %cst = arith.constant dense<0.000000e+00> : vector<32x32xf32>
    %2 = tpu.matmul %0, %1, %cst {dimension_numbers = #tpu.dot_dimension_numbers<[1], [0], [0], [1], [0, 0, 1, 1], [], []>} : vector<32x16xbf16>, vector<16x32xbf16>, vector<32x32xf32> -> vector<32x32xf32>
    %c0_3 = arith.constant 0 : index
    %c0_4 = arith.constant 0 : index
    %3 = vector.load %arg3[%c0_3, %c0_4] : memref<1x32xf32, #tpu.memory_space<vmem>>, vector<1x32xf32>
    %4 = vector.broadcast %3 : vector<1x32xf32> to vector<32x32xf32>
    %5 = arith.addf %2, %4 : vector<32x32xf32>
    %6 = arith.truncf %5 : vector<32x32xf32> to vector<32x32xbf16>
    %c0_5 = arith.constant 0 : index
    %c0_6 = arith.constant 0 : index
    %7 = vector.load %arg4[%c0_5, %c0_6] : memref<32x32xbf16, #tpu.memory_space<vmem>>, vector<32x32xbf16>
    tpu.vector_store %arg4[%c0_5, %c0_6], %6 {strides = array<i32>} : memref<32x32xbf16, #tpu.memory_space<vmem>>, vector<32x32xbf16>,
    return
  }
  func.func @transform_0(%arg0: i32) -> (i32, i32) {
    %c0_i32 = arith.constant 0 : i32
    %c0_i32_0 = arith.constant 0 : i32
    return %arg0, %c0_i32 : i32, i32
  }
  func.func @transform_1(%arg0: i32) -> (i32, i32) {
    %c0_i32 = arith.constant 0 : i32
    %c0_i32_0 = arith.constant 0 : i32
    %c0_i32_1 = arith.constant 0 : i32
    return %c0_i32, %c0_i32_0 : i32, i32
  }
  func.func @transform_2(%arg0: i32) -> (i32, i32) {
    %c0_i32 = arith.constant 0 : i32
    %c0_i32_0 = arith.constant 0 : i32
    %c0_i32_1 = arith.constant 0 : i32
    return %c0_i32, %c0_i32_0 : i32, i32
  }
  func.func @transform_3(%arg0: i32) -> (i32, i32) {
    %c0_i32 = arith.constant 0 : i32
    %c0_i32_0 = arith.constant 0 : i32
    return %arg0, %c0_i32 : i32, i32
  }
}

module attributes {stable_mosaic.version = 11 : i64} {
  func.func @_conv3x3_kernel(%arg0: i32, %arg1: i32, %arg2: memref<1x1x10x10x8xbf16, #tpu.memory_space<vmem>>, %arg3: memref<1x1x10x10x8xbf16, #tpu.memory_space<vmem>>, %arg4: memref<72x8xbf16, #tpu.memory_space<vmem>>, %arg5: memref<72x8xbf16, #tpu.memory_space<vmem>>, %arg6: memref<1x8xf32, #tpu.memory_space<vmem>>, %arg7: memref<1x1x8x8x8xbf16, #tpu.memory_space<vmem>>) attributes {dimension_semantics = [#tpu.dimension_semantics<parallel>, #tpu.dimension_semantics<parallel>], iteration_bounds = array<i64: 2, 1>, scalar_prefetch = 0 : i64, scratch_operands = 0 : i64, tpu.core_type = #tpu.core_type<tc>, window_params = [{transform_indices = @transform_0, window_bounds = array<i64: 1, 1, 10, 10, 8>}, {transform_indices = @transform_1, window_bounds = array<i64: 1, 1, 10, 10, 8>}, {pipeline_mode = #tpu.pipeline_mode<synchronous>, transform_indices = @transform_2, window_bounds = array<i64: 72, 8>}, {pipeline_mode = #tpu.pipeline_mode<synchronous>, transform_indices = @transform_3, window_bounds = array<i64: 72, 8>}, {pipeline_mode = #tpu.pipeline_mode<synchronous>, transform_indices = @transform_4, window_bounds = array<i64: 1, 8>}, {transform_indices = @transform_5, window_bounds = array<i64: 1, 1, 8, 8, 8>}]} {
    %cst = arith.constant 0.000000e+00 : f32
    %0 = vector.broadcast %cst : f32 to vector<64x8xf32>
    %c0 = arith.constant 0 : index
    %c0_0 = arith.constant 0 : index
    %c0_1 = arith.constant 0 : index
    %c0_2 = arith.constant 0 : index
    %c0_3 = arith.constant 0 : index
    %1 = vector.load %arg2[%c0, %c0_0, %c0_1, %c0_2, %c0_3] : memref<1x1x10x10x8xbf16, #tpu.memory_space<vmem>>, vector<1x1x10x10x8xbf16>
    %2 = vector.shape_cast %1 : vector<1x1x10x10x8xbf16> to vector<10x10x8xbf16>
    %3 = vector.extract_strided_slice %2 {offsets = [0, 0, 0], sizes = [8, 8, 8], strides = [1, 1, 1]} : vector<10x10x8xbf16> to vector<8x8x8xbf16>
    %4 = vector.extract_strided_slice %2 {offsets = [0, 1, 0], sizes = [8, 8, 8], strides = [1, 1, 1]} : vector<10x10x8xbf16> to vector<8x8x8xbf16>
    %5 = vector.extract_strided_slice %2 {offsets = [0, 2, 0], sizes = [8, 8, 8], strides = [1, 1, 1]} : vector<10x10x8xbf16> to vector<8x8x8xbf16>
    %6 = vector.extract_strided_slice %2 {offsets = [1, 0, 0], sizes = [8, 8, 8], strides = [1, 1, 1]} : vector<10x10x8xbf16> to vector<8x8x8xbf16>
    %7 = vector.extract_strided_slice %2 {offsets = [1, 1, 0], sizes = [8, 8, 8], strides = [1, 1, 1]} : vector<10x10x8xbf16> to vector<8x8x8xbf16>
    %8 = vector.extract_strided_slice %2 {offsets = [1, 2, 0], sizes = [8, 8, 8], strides = [1, 1, 1]} : vector<10x10x8xbf16> to vector<8x8x8xbf16>
    %9 = vector.extract_strided_slice %2 {offsets = [2, 0, 0], sizes = [8, 8, 8], strides = [1, 1, 1]} : vector<10x10x8xbf16> to vector<8x8x8xbf16>
    %10 = vector.extract_strided_slice %2 {offsets = [2, 1, 0], sizes = [8, 8, 8], strides = [1, 1, 1]} : vector<10x10x8xbf16> to vector<8x8x8xbf16>
    %11 = vector.extract_strided_slice %2 {offsets = [2, 2, 0], sizes = [8, 8, 8], strides = [1, 1, 1]} : vector<10x10x8xbf16> to vector<8x8x8xbf16>
    %12 = tpu.concatenate %3, %4, %5, %6, %7, %8, %9, %10, %11 in 2 : vector<8x8x8xbf16>, vector<8x8x8xbf16>, vector<8x8x8xbf16>, vector<8x8x8xbf16>, vector<8x8x8xbf16>, vector<8x8x8xbf16>, vector<8x8x8xbf16>, vector<8x8x8xbf16>, vector<8x8x8xbf16> -> vector<8x8x72xbf16>
    %13 = vector.shape_cast %12 : vector<8x8x72xbf16> to vector<64x72xbf16>
    %c0_4 = arith.constant 0 : index
    %c0_5 = arith.constant 0 : index
    %14 = vector.load %arg4[%c0_4, %c0_5] : memref<72x8xbf16, #tpu.memory_space<vmem>>, vector<72x8xbf16>
    %cst_6 = arith.constant dense<0.000000e+00> : vector<64x8xf32>
    %15 = tpu.matmul %13, %14, %cst_6 {dimension_numbers = #tpu.dot_dimension_numbers<[1], [0], [0], [1], [0, 0, 1, 1], [], []>} : vector<64x72xbf16>, vector<72x8xbf16>, vector<64x8xf32> -> vector<64x8xf32>
    %16 = arith.addf %0, %15 : vector<64x8xf32>
    %c0_7 = arith.constant 0 : index
    %c0_8 = arith.constant 0 : index
    %c0_9 = arith.constant 0 : index
    %c0_10 = arith.constant 0 : index
    %c0_11 = arith.constant 0 : index
    %17 = vector.load %arg3[%c0_7, %c0_8, %c0_9, %c0_10, %c0_11] : memref<1x1x10x10x8xbf16, #tpu.memory_space<vmem>>, vector<1x1x10x10x8xbf16>
    %18 = vector.shape_cast %17 : vector<1x1x10x10x8xbf16> to vector<10x10x8xbf16>
    %19 = vector.extract_strided_slice %18 {offsets = [0, 0, 0], sizes = [8, 8, 8], strides = [1, 1, 1]} : vector<10x10x8xbf16> to vector<8x8x8xbf16>
    %20 = vector.extract_strided_slice %18 {offsets = [0, 1, 0], sizes = [8, 8, 8], strides = [1, 1, 1]} : vector<10x10x8xbf16> to vector<8x8x8xbf16>
    %21 = vector.extract_strided_slice %18 {offsets = [0, 2, 0], sizes = [8, 8, 8], strides = [1, 1, 1]} : vector<10x10x8xbf16> to vector<8x8x8xbf16>
    %22 = vector.extract_strided_slice %18 {offsets = [1, 0, 0], sizes = [8, 8, 8], strides = [1, 1, 1]} : vector<10x10x8xbf16> to vector<8x8x8xbf16>
    %23 = vector.extract_strided_slice %18 {offsets = [1, 1, 0], sizes = [8, 8, 8], strides = [1, 1, 1]} : vector<10x10x8xbf16> to vector<8x8x8xbf16>
    %24 = vector.extract_strided_slice %18 {offsets = [1, 2, 0], sizes = [8, 8, 8], strides = [1, 1, 1]} : vector<10x10x8xbf16> to vector<8x8x8xbf16>
    %25 = vector.extract_strided_slice %18 {offsets = [2, 0, 0], sizes = [8, 8, 8], strides = [1, 1, 1]} : vector<10x10x8xbf16> to vector<8x8x8xbf16>
    %26 = vector.extract_strided_slice %18 {offsets = [2, 1, 0], sizes = [8, 8, 8], strides = [1, 1, 1]} : vector<10x10x8xbf16> to vector<8x8x8xbf16>
    %27 = vector.extract_strided_slice %18 {offsets = [2, 2, 0], sizes = [8, 8, 8], strides = [1, 1, 1]} : vector<10x10x8xbf16> to vector<8x8x8xbf16>
    %28 = tpu.concatenate %19, %20, %21, %22, %23, %24, %25, %26, %27 in 2 : vector<8x8x8xbf16>, vector<8x8x8xbf16>, vector<8x8x8xbf16>, vector<8x8x8xbf16>, vector<8x8x8xbf16>, vector<8x8x8xbf16>, vector<8x8x8xbf16>, vector<8x8x8xbf16>, vector<8x8x8xbf16> -> vector<8x8x72xbf16>
    %29 = vector.shape_cast %28 : vector<8x8x72xbf16> to vector<64x72xbf16>
    %c0_12 = arith.constant 0 : index
    %c0_13 = arith.constant 0 : index
    %30 = vector.load %arg5[%c0_12, %c0_13] : memref<72x8xbf16, #tpu.memory_space<vmem>>, vector<72x8xbf16>
    %cst_14 = arith.constant dense<0.000000e+00> : vector<64x8xf32>
    %31 = tpu.matmul %29, %30, %cst_14 {dimension_numbers = #tpu.dot_dimension_numbers<[1], [0], [0], [1], [0, 0, 1, 1], [], []>} : vector<64x72xbf16>, vector<72x8xbf16>, vector<64x8xf32> -> vector<64x8xf32>
    %32 = arith.addf %16, %31 : vector<64x8xf32>
    %c0_15 = arith.constant 0 : index
    %c0_16 = arith.constant 0 : index
    %33 = vector.load %arg6[%c0_15, %c0_16] : memref<1x8xf32, #tpu.memory_space<vmem>>, vector<1x8xf32>
    %34 = vector.broadcast %33 : vector<1x8xf32> to vector<64x8xf32>
    %35 = arith.addf %32, %34 : vector<64x8xf32>
    %cst_17 = arith.constant 0.000000e+00 : f32
    %36 = vector.broadcast %cst_17 : f32 to vector<64x8xf32>
    %37 = arith.maximumf %35, %36 : vector<64x8xf32>
    %38 = vector.shape_cast %37 : vector<64x8xf32> to vector<8x8x8xf32>
    %39 = arith.truncf %38 : vector<8x8x8xf32> to vector<8x8x8xbf16>
    %c0_18 = arith.constant 0 : index
    %c0_19 = arith.constant 0 : index
    %c0_20 = arith.constant 0 : index
    %c0_21 = arith.constant 0 : index
    %c0_22 = arith.constant 0 : index
    %40 = vector.load %arg7[%c0_18, %c0_19, %c0_20, %c0_21, %c0_22] : memref<1x1x8x8x8xbf16, #tpu.memory_space<vmem>>, vector<1x1x8x8x8xbf16>
    %41 = vector.shape_cast %40 : vector<1x1x8x8x8xbf16> to vector<8x8x8xbf16>
    %42 = vector.shape_cast %39 : vector<8x8x8xbf16> to vector<1x1x8x8x8xbf16>
    tpu.vector_store %arg7[%c0_18, %c0_19, %c0_20, %c0_21, %c0_22], %42 {strides = array<i32>} : memref<1x1x8x8x8xbf16, #tpu.memory_space<vmem>>, vector<1x1x8x8x8xbf16>,
    return
  }
  func.func @transform_0(%arg0: i32, %arg1: i32) -> (i32, i32, i32, i32, i32) {
    %c0_i32 = arith.constant 0 : i32
    %c0_i32_0 = arith.constant 0 : i32
    %c0_i32_1 = arith.constant 0 : i32
    %c0_i32_2 = arith.constant 0 : i32
    return %arg0, %arg1, %c0_i32, %c0_i32_0, %c0_i32_1 : i32, i32, i32, i32, i32
  }
  func.func @transform_1(%arg0: i32, %arg1: i32) -> (i32, i32, i32, i32, i32) {
    %c0_i32 = arith.constant 0 : i32
    %c0_i32_0 = arith.constant 0 : i32
    %c0_i32_1 = arith.constant 0 : i32
    %c0_i32_2 = arith.constant 0 : i32
    return %arg0, %arg1, %c0_i32, %c0_i32_0, %c0_i32_1 : i32, i32, i32, i32, i32
  }
  func.func @transform_2(%arg0: i32, %arg1: i32) -> (i32, i32) {
    %c0_i32 = arith.constant 0 : i32
    %c0_i32_0 = arith.constant 0 : i32
    %c0_i32_1 = arith.constant 0 : i32
    return %c0_i32, %c0_i32_0 : i32, i32
  }
  func.func @transform_3(%arg0: i32, %arg1: i32) -> (i32, i32) {
    %c0_i32 = arith.constant 0 : i32
    %c0_i32_0 = arith.constant 0 : i32
    %c0_i32_1 = arith.constant 0 : i32
    return %c0_i32, %c0_i32_0 : i32, i32
  }
  func.func @transform_4(%arg0: i32, %arg1: i32) -> (i32, i32) {
    %c0_i32 = arith.constant 0 : i32
    %c0_i32_0 = arith.constant 0 : i32
    %c0_i32_1 = arith.constant 0 : i32
    return %c0_i32, %c0_i32_0 : i32, i32
  }
  func.func @transform_5(%arg0: i32, %arg1: i32) -> (i32, i32, i32, i32, i32) {
    %c0_i32 = arith.constant 0 : i32
    %c0_i32_0 = arith.constant 0 : i32
    %c0_i32_1 = arith.constant 0 : i32
    %c0_i32_2 = arith.constant 0 : i32
    return %arg0, %arg1, %c0_i32, %c0_i32_0, %c0_i32_1 : i32, i32, i32, i32, i32
  }
}

module attributes {stable_mosaic.version = 11 : i64} {
  func.func @_deconv2x2_kernel(%arg0: i32, %arg1: memref<128x8xbf16, #tpu.memory_space<vmem>>, %arg2: memref<8x16xbf16, #tpu.memory_space<vmem>>, %arg3: memref<1x16xf32, #tpu.memory_space<vmem>>, %arg4: memref<128x16xbf16, #tpu.memory_space<vmem>>) attributes {dimension_semantics = [#tpu.dimension_semantics<parallel>], iteration_bounds = array<i64: 1>, scalar_prefetch = 0 : i64, scratch_operands = 0 : i64, tpu.core_type = #tpu.core_type<tc>, window_params = [{transform_indices = @transform_0, window_bounds = array<i64: 128, 8>}, {pipeline_mode = #tpu.pipeline_mode<synchronous>, transform_indices = @transform_1, window_bounds = array<i64: 8, 16>}, {pipeline_mode = #tpu.pipeline_mode<synchronous>, transform_indices = @transform_2, window_bounds = array<i64: 1, 16>}, {transform_indices = @transform_3, window_bounds = array<i64: 128, 16>}]} {
    %c0 = arith.constant 0 : index
    %c0_0 = arith.constant 0 : index
    %0 = vector.load %arg1[%c0, %c0_0] : memref<128x8xbf16, #tpu.memory_space<vmem>>, vector<128x8xbf16>
    %c0_1 = arith.constant 0 : index
    %c0_2 = arith.constant 0 : index
    %1 = vector.load %arg2[%c0_1, %c0_2] : memref<8x16xbf16, #tpu.memory_space<vmem>>, vector<8x16xbf16>
    %cst = arith.constant dense<0.000000e+00> : vector<128x16xf32>
    %2 = tpu.matmul %0, %1, %cst {dimension_numbers = #tpu.dot_dimension_numbers<[1], [0], [0], [1], [0, 0, 1, 1], [], []>} : vector<128x8xbf16>, vector<8x16xbf16>, vector<128x16xf32> -> vector<128x16xf32>
    %c0_3 = arith.constant 0 : index
    %c0_4 = arith.constant 0 : index
    %3 = vector.load %arg3[%c0_3, %c0_4] : memref<1x16xf32, #tpu.memory_space<vmem>>, vector<1x16xf32>
    %4 = vector.broadcast %3 : vector<1x16xf32> to vector<128x16xf32>
    %5 = arith.addf %2, %4 : vector<128x16xf32>
    %6 = arith.truncf %5 : vector<128x16xf32> to vector<128x16xbf16>
    %c0_5 = arith.constant 0 : index
    %c0_6 = arith.constant 0 : index
    %7 = vector.load %arg4[%c0_5, %c0_6] : memref<128x16xbf16, #tpu.memory_space<vmem>>, vector<128x16xbf16>
    tpu.vector_store %arg4[%c0_5, %c0_6], %6 {strides = array<i32>} : memref<128x16xbf16, #tpu.memory_space<vmem>>, vector<128x16xbf16>,
    return
  }
  func.func @transform_0(%arg0: i32) -> (i32, i32) {
    %c0_i32 = arith.constant 0 : i32
    %c0_i32_0 = arith.constant 0 : i32
    return %arg0, %c0_i32 : i32, i32
  }
  func.func @transform_1(%arg0: i32) -> (i32, i32) {
    %c0_i32 = arith.constant 0 : i32
    %c0_i32_0 = arith.constant 0 : i32
    %c0_i32_1 = arith.constant 0 : i32
    return %c0_i32, %c0_i32_0 : i32, i32
  }
  func.func @transform_2(%arg0: i32) -> (i32, i32) {
    %c0_i32 = arith.constant 0 : i32
    %c0_i32_0 = arith.constant 0 : i32
    %c0_i32_1 = arith.constant 0 : i32
    return %c0_i32, %c0_i32_0 : i32, i32
  }
  func.func @transform_3(%arg0: i32) -> (i32, i32) {
    %c0_i32 = arith.constant 0 : i32
    %c0_i32_0 = arith.constant 0 : i32
    return %arg0, %c0_i32 : i32, i32
  }
}

module attributes {stable_mosaic.version = 11 : i64} {
  func.func @_conv3x3_kernel(%arg0: i32, %arg1: i32, %arg2: memref<1x1x18x18x4xbf16, #tpu.memory_space<vmem>>, %arg3: memref<1x1x18x18x4xbf16, #tpu.memory_space<vmem>>, %arg4: memref<36x4xbf16, #tpu.memory_space<vmem>>, %arg5: memref<36x4xbf16, #tpu.memory_space<vmem>>, %arg6: memref<1x4xf32, #tpu.memory_space<vmem>>, %arg7: memref<1x1x16x16x4xbf16, #tpu.memory_space<vmem>>) attributes {dimension_semantics = [#tpu.dimension_semantics<parallel>, #tpu.dimension_semantics<parallel>], iteration_bounds = array<i64: 2, 1>, scalar_prefetch = 0 : i64, scratch_operands = 0 : i64, tpu.core_type = #tpu.core_type<tc>, window_params = [{transform_indices = @transform_0, window_bounds = array<i64: 1, 1, 18, 18, 4>}, {transform_indices = @transform_1, window_bounds = array<i64: 1, 1, 18, 18, 4>}, {pipeline_mode = #tpu.pipeline_mode<synchronous>, transform_indices = @transform_2, window_bounds = array<i64: 36, 4>}, {pipeline_mode = #tpu.pipeline_mode<synchronous>, transform_indices = @transform_3, window_bounds = array<i64: 36, 4>}, {pipeline_mode = #tpu.pipeline_mode<synchronous>, transform_indices = @transform_4, window_bounds = array<i64: 1, 4>}, {transform_indices = @transform_5, window_bounds = array<i64: 1, 1, 16, 16, 4>}]} {
    %cst = arith.constant 0.000000e+00 : f32
    %0 = vector.broadcast %cst : f32 to vector<256x4xf32>
    %c0 = arith.constant 0 : index
    %c0_0 = arith.constant 0 : index
    %c0_1 = arith.constant 0 : index
    %c0_2 = arith.constant 0 : index
    %c0_3 = arith.constant 0 : index
    %1 = vector.load %arg2[%c0, %c0_0, %c0_1, %c0_2, %c0_3] : memref<1x1x18x18x4xbf16, #tpu.memory_space<vmem>>, vector<1x1x18x18x4xbf16>
    %2 = vector.shape_cast %1 : vector<1x1x18x18x4xbf16> to vector<18x18x4xbf16>
    %3 = vector.extract_strided_slice %2 {offsets = [0, 0, 0], sizes = [16, 16, 4], strides = [1, 1, 1]} : vector<18x18x4xbf16> to vector<16x16x4xbf16>
    %4 = vector.extract_strided_slice %2 {offsets = [0, 1, 0], sizes = [16, 16, 4], strides = [1, 1, 1]} : vector<18x18x4xbf16> to vector<16x16x4xbf16>
    %5 = vector.extract_strided_slice %2 {offsets = [0, 2, 0], sizes = [16, 16, 4], strides = [1, 1, 1]} : vector<18x18x4xbf16> to vector<16x16x4xbf16>
    %6 = vector.extract_strided_slice %2 {offsets = [1, 0, 0], sizes = [16, 16, 4], strides = [1, 1, 1]} : vector<18x18x4xbf16> to vector<16x16x4xbf16>
    %7 = vector.extract_strided_slice %2 {offsets = [1, 1, 0], sizes = [16, 16, 4], strides = [1, 1, 1]} : vector<18x18x4xbf16> to vector<16x16x4xbf16>
    %8 = vector.extract_strided_slice %2 {offsets = [1, 2, 0], sizes = [16, 16, 4], strides = [1, 1, 1]} : vector<18x18x4xbf16> to vector<16x16x4xbf16>
    %9 = vector.extract_strided_slice %2 {offsets = [2, 0, 0], sizes = [16, 16, 4], strides = [1, 1, 1]} : vector<18x18x4xbf16> to vector<16x16x4xbf16>
    %10 = vector.extract_strided_slice %2 {offsets = [2, 1, 0], sizes = [16, 16, 4], strides = [1, 1, 1]} : vector<18x18x4xbf16> to vector<16x16x4xbf16>
    %11 = vector.extract_strided_slice %2 {offsets = [2, 2, 0], sizes = [16, 16, 4], strides = [1, 1, 1]} : vector<18x18x4xbf16> to vector<16x16x4xbf16>
    %12 = tpu.concatenate %3, %4, %5, %6, %7, %8, %9, %10, %11 in 2 : vector<16x16x4xbf16>, vector<16x16x4xbf16>, vector<16x16x4xbf16>, vector<16x16x4xbf16>, vector<16x16x4xbf16>, vector<16x16x4xbf16>, vector<16x16x4xbf16>, vector<16x16x4xbf16>, vector<16x16x4xbf16> -> vector<16x16x36xbf16>
    %13 = vector.shape_cast %12 : vector<16x16x36xbf16> to vector<256x36xbf16>
    %c0_4 = arith.constant 0 : index
    %c0_5 = arith.constant 0 : index
    %14 = vector.load %arg4[%c0_4, %c0_5] : memref<36x4xbf16, #tpu.memory_space<vmem>>, vector<36x4xbf16>
    %cst_6 = arith.constant dense<0.000000e+00> : vector<256x4xf32>
    %15 = tpu.matmul %13, %14, %cst_6 {dimension_numbers = #tpu.dot_dimension_numbers<[1], [0], [0], [1], [0, 0, 1, 1], [], []>} : vector<256x36xbf16>, vector<36x4xbf16>, vector<256x4xf32> -> vector<256x4xf32>
    %16 = arith.addf %0, %15 : vector<256x4xf32>
    %c0_7 = arith.constant 0 : index
    %c0_8 = arith.constant 0 : index
    %c0_9 = arith.constant 0 : index
    %c0_10 = arith.constant 0 : index
    %c0_11 = arith.constant 0 : index
    %17 = vector.load %arg3[%c0_7, %c0_8, %c0_9, %c0_10, %c0_11] : memref<1x1x18x18x4xbf16, #tpu.memory_space<vmem>>, vector<1x1x18x18x4xbf16>
    %18 = vector.shape_cast %17 : vector<1x1x18x18x4xbf16> to vector<18x18x4xbf16>
    %19 = vector.extract_strided_slice %18 {offsets = [0, 0, 0], sizes = [16, 16, 4], strides = [1, 1, 1]} : vector<18x18x4xbf16> to vector<16x16x4xbf16>
    %20 = vector.extract_strided_slice %18 {offsets = [0, 1, 0], sizes = [16, 16, 4], strides = [1, 1, 1]} : vector<18x18x4xbf16> to vector<16x16x4xbf16>
    %21 = vector.extract_strided_slice %18 {offsets = [0, 2, 0], sizes = [16, 16, 4], strides = [1, 1, 1]} : vector<18x18x4xbf16> to vector<16x16x4xbf16>
    %22 = vector.extract_strided_slice %18 {offsets = [1, 0, 0], sizes = [16, 16, 4], strides = [1, 1, 1]} : vector<18x18x4xbf16> to vector<16x16x4xbf16>
    %23 = vector.extract_strided_slice %18 {offsets = [1, 1, 0], sizes = [16, 16, 4], strides = [1, 1, 1]} : vector<18x18x4xbf16> to vector<16x16x4xbf16>
    %24 = vector.extract_strided_slice %18 {offsets = [1, 2, 0], sizes = [16, 16, 4], strides = [1, 1, 1]} : vector<18x18x4xbf16> to vector<16x16x4xbf16>
    %25 = vector.extract_strided_slice %18 {offsets = [2, 0, 0], sizes = [16, 16, 4], strides = [1, 1, 1]} : vector<18x18x4xbf16> to vector<16x16x4xbf16>
    %26 = vector.extract_strided_slice %18 {offsets = [2, 1, 0], sizes = [16, 16, 4], strides = [1, 1, 1]} : vector<18x18x4xbf16> to vector<16x16x4xbf16>
    %27 = vector.extract_strided_slice %18 {offsets = [2, 2, 0], sizes = [16, 16, 4], strides = [1, 1, 1]} : vector<18x18x4xbf16> to vector<16x16x4xbf16>
    %28 = tpu.concatenate %19, %20, %21, %22, %23, %24, %25, %26, %27 in 2 : vector<16x16x4xbf16>, vector<16x16x4xbf16>, vector<16x16x4xbf16>, vector<16x16x4xbf16>, vector<16x16x4xbf16>, vector<16x16x4xbf16>, vector<16x16x4xbf16>, vector<16x16x4xbf16>, vector<16x16x4xbf16> -> vector<16x16x36xbf16>
    %29 = vector.shape_cast %28 : vector<16x16x36xbf16> to vector<256x36xbf16>
    %c0_12 = arith.constant 0 : index
    %c0_13 = arith.constant 0 : index
    %30 = vector.load %arg5[%c0_12, %c0_13] : memref<36x4xbf16, #tpu.memory_space<vmem>>, vector<36x4xbf16>
    %cst_14 = arith.constant dense<0.000000e+00> : vector<256x4xf32>
    %31 = tpu.matmul %29, %30, %cst_14 {dimension_numbers = #tpu.dot_dimension_numbers<[1], [0], [0], [1], [0, 0, 1, 1], [], []>} : vector<256x36xbf16>, vector<36x4xbf16>, vector<256x4xf32> -> vector<256x4xf32>
    %32 = arith.addf %16, %31 : vector<256x4xf32>
    %c0_15 = arith.constant 0 : index
    %c0_16 = arith.constant 0 : index
    %33 = vector.load %arg6[%c0_15, %c0_16] : memref<1x4xf32, #tpu.memory_space<vmem>>, vector<1x4xf32>
    %34 = vector.broadcast %33 : vector<1x4xf32> to vector<256x4xf32>
    %35 = arith.addf %32, %34 : vector<256x4xf32>
    %cst_17 = arith.constant 0.000000e+00 : f32
    %36 = vector.broadcast %cst_17 : f32 to vector<256x4xf32>
    %37 = arith.maximumf %35, %36 : vector<256x4xf32>
    %38 = vector.shape_cast %37 : vector<256x4xf32> to vector<16x16x4xf32>
    %39 = arith.truncf %38 : vector<16x16x4xf32> to vector<16x16x4xbf16>
    %c0_18 = arith.constant 0 : index
    %c0_19 = arith.constant 0 : index
    %c0_20 = arith.constant 0 : index
    %c0_21 = arith.constant 0 : index
    %c0_22 = arith.constant 0 : index
    %40 = vector.load %arg7[%c0_18, %c0_19, %c0_20, %c0_21, %c0_22] : memref<1x1x16x16x4xbf16, #tpu.memory_space<vmem>>, vector<1x1x16x16x4xbf16>
    %41 = vector.shape_cast %40 : vector<1x1x16x16x4xbf16> to vector<16x16x4xbf16>
    %42 = vector.shape_cast %39 : vector<16x16x4xbf16> to vector<1x1x16x16x4xbf16>
    tpu.vector_store %arg7[%c0_18, %c0_19, %c0_20, %c0_21, %c0_22], %42 {strides = array<i32>} : memref<1x1x16x16x4xbf16, #tpu.memory_space<vmem>>, vector<1x1x16x16x4xbf16>,
    return
  }
  func.func @transform_0(%arg0: i32, %arg1: i32) -> (i32, i32, i32, i32, i32) {
    %c0_i32 = arith.constant 0 : i32
    %c0_i32_0 = arith.constant 0 : i32
    %c0_i32_1 = arith.constant 0 : i32
    %c0_i32_2 = arith.constant 0 : i32
    return %arg0, %arg1, %c0_i32, %c0_i32_0, %c0_i32_1 : i32, i32, i32, i32, i32
  }
  func.func @transform_1(%arg0: i32, %arg1: i32) -> (i32, i32, i32, i32, i32) {
    %c0_i32 = arith.constant 0 : i32
    %c0_i32_0 = arith.constant 0 : i32
    %c0_i32_1 = arith.constant 0 : i32
    %c0_i32_2 = arith.constant 0 : i32
    return %arg0, %arg1, %c0_i32, %c0_i32_0, %c0_i32_1 : i32, i32, i32, i32, i32
  }
  func.func @transform_2(%arg0: i32, %arg1: i32) -> (i32, i32) {
    %c0_i32 = arith.constant 0 : i32
    %c0_i32_0 = arith.constant 0 : i32
    %c0_i32_1 = arith.constant 0 : i32
    return %c0_i32, %c0_i32_0 : i32, i32
  }
  func.func @transform_3(%arg0: i32, %arg1: i32) -> (i32, i32) {
    %c0_i32 = arith.constant 0 : i32
    %c0_i32_0 = arith.constant 0 : i32
    %c0_i32_1 = arith.constant 0 : i32
    return %c0_i32, %c0_i32_0 : i32, i32
  }
  func.func @transform_4(%arg0: i32, %arg1: i32) -> (i32, i32) {
    %c0_i32 = arith.constant 0 : i32
    %c0_i32_0 = arith.constant 0 : i32
    %c0_i32_1 = arith.constant 0 : i32
    return %c0_i32, %c0_i32_0 : i32, i32
  }
  func.func @transform_5(%arg0: i32, %arg1: i32) -> (i32, i32, i32, i32, i32) {
    %c0_i32 = arith.constant 0 : i32
    %c0_i32_0 = arith.constant 0 : i32
    %c0_i32_1 = arith.constant 0 : i32
    %c0_i32_2 = arith.constant 0 : i32
    return %arg0, %arg1, %c0_i32, %c0_i32_0, %c0_i32_1 : i32, i32, i32, i32, i32
  }
}

module attributes {stable_mosaic.version = 11 : i64} {
  func.func @_conv3x3_kernel(%arg0: i32, %arg1: i32, %arg2: memref<1x1x18x18x4xbf16, #tpu.memory_space<vmem>>, %arg3: memref<36x1xbf16, #tpu.memory_space<vmem>>, %arg4: memref<1x1xf32, #tpu.memory_space<vmem>>, %arg5: memref<1x1x16x16x1xf32, #tpu.memory_space<vmem>>) attributes {dimension_semantics = [#tpu.dimension_semantics<parallel>, #tpu.dimension_semantics<parallel>], iteration_bounds = array<i64: 2, 1>, scalar_prefetch = 0 : i64, scratch_operands = 0 : i64, tpu.core_type = #tpu.core_type<tc>, window_params = [{transform_indices = @transform_0, window_bounds = array<i64: 1, 1, 18, 18, 4>}, {pipeline_mode = #tpu.pipeline_mode<synchronous>, transform_indices = @transform_1, window_bounds = array<i64: 36, 1>}, {pipeline_mode = #tpu.pipeline_mode<synchronous>, transform_indices = @transform_2, window_bounds = array<i64: 1, 1>}, {transform_indices = @transform_3, window_bounds = array<i64: 1, 1, 16, 16, 1>}]} {
    %cst = arith.constant 0.000000e+00 : f32
    %0 = vector.broadcast %cst : f32 to vector<256x1xf32>
    %c0 = arith.constant 0 : index
    %c0_0 = arith.constant 0 : index
    %c0_1 = arith.constant 0 : index
    %c0_2 = arith.constant 0 : index
    %c0_3 = arith.constant 0 : index
    %1 = vector.load %arg2[%c0, %c0_0, %c0_1, %c0_2, %c0_3] : memref<1x1x18x18x4xbf16, #tpu.memory_space<vmem>>, vector<1x1x18x18x4xbf16>
    %2 = vector.shape_cast %1 : vector<1x1x18x18x4xbf16> to vector<18x18x4xbf16>
    %3 = vector.extract_strided_slice %2 {offsets = [0, 0, 0], sizes = [16, 16, 4], strides = [1, 1, 1]} : vector<18x18x4xbf16> to vector<16x16x4xbf16>
    %4 = vector.extract_strided_slice %2 {offsets = [0, 1, 0], sizes = [16, 16, 4], strides = [1, 1, 1]} : vector<18x18x4xbf16> to vector<16x16x4xbf16>
    %5 = vector.extract_strided_slice %2 {offsets = [0, 2, 0], sizes = [16, 16, 4], strides = [1, 1, 1]} : vector<18x18x4xbf16> to vector<16x16x4xbf16>
    %6 = vector.extract_strided_slice %2 {offsets = [1, 0, 0], sizes = [16, 16, 4], strides = [1, 1, 1]} : vector<18x18x4xbf16> to vector<16x16x4xbf16>
    %7 = vector.extract_strided_slice %2 {offsets = [1, 1, 0], sizes = [16, 16, 4], strides = [1, 1, 1]} : vector<18x18x4xbf16> to vector<16x16x4xbf16>
    %8 = vector.extract_strided_slice %2 {offsets = [1, 2, 0], sizes = [16, 16, 4], strides = [1, 1, 1]} : vector<18x18x4xbf16> to vector<16x16x4xbf16>
    %9 = vector.extract_strided_slice %2 {offsets = [2, 0, 0], sizes = [16, 16, 4], strides = [1, 1, 1]} : vector<18x18x4xbf16> to vector<16x16x4xbf16>
    %10 = vector.extract_strided_slice %2 {offsets = [2, 1, 0], sizes = [16, 16, 4], strides = [1, 1, 1]} : vector<18x18x4xbf16> to vector<16x16x4xbf16>
    %11 = vector.extract_strided_slice %2 {offsets = [2, 2, 0], sizes = [16, 16, 4], strides = [1, 1, 1]} : vector<18x18x4xbf16> to vector<16x16x4xbf16>
    %12 = tpu.concatenate %3, %4, %5, %6, %7, %8, %9, %10, %11 in 2 : vector<16x16x4xbf16>, vector<16x16x4xbf16>, vector<16x16x4xbf16>, vector<16x16x4xbf16>, vector<16x16x4xbf16>, vector<16x16x4xbf16>, vector<16x16x4xbf16>, vector<16x16x4xbf16>, vector<16x16x4xbf16> -> vector<16x16x36xbf16>
    %13 = vector.shape_cast %12 : vector<16x16x36xbf16> to vector<256x36xbf16>
    %c0_4 = arith.constant 0 : index
    %c0_5 = arith.constant 0 : index
    %14 = vector.load %arg3[%c0_4, %c0_5] : memref<36x1xbf16, #tpu.memory_space<vmem>>, vector<36x1xbf16>
    %cst_6 = arith.constant dense<0.000000e+00> : vector<256x1xf32>
    %15 = tpu.matmul %13, %14, %cst_6 {dimension_numbers = #tpu.dot_dimension_numbers<[1], [0], [0], [1], [0, 0, 1, 1], [], []>} : vector<256x36xbf16>, vector<36x1xbf16>, vector<256x1xf32> -> vector<256x1xf32>
    %16 = arith.addf %0, %15 : vector<256x1xf32>
    %c0_7 = arith.constant 0 : index
    %c0_8 = arith.constant 0 : index
    %17 = vector.load %arg4[%c0_7, %c0_8] : memref<1x1xf32, #tpu.memory_space<vmem>>, vector<1x1xf32>
    %18 = vector.broadcast %17 : vector<1x1xf32> to vector<256x1xf32>
    %19 = arith.addf %16, %18 : vector<256x1xf32>
    %cst_9 = arith.constant 0.000000e+00 : f32
    %20 = vector.broadcast %cst_9 : f32 to vector<256x1xf32>
    %21 = arith.subf %20, %19 : vector<256x1xf32>
    %22 = math.exp %21 : vector<256x1xf32>
    %cst_10 = arith.constant 1.000000e+00 : f32
    %23 = vector.broadcast %cst_10 : f32 to vector<256x1xf32>
    %24 = arith.addf %23, %22 : vector<256x1xf32>
    %cst_11 = arith.constant 1.000000e+00 : f32
    %25 = vector.broadcast %cst_11 : f32 to vector<256x1xf32>
    %26 = arith.divf %25, %24 : vector<256x1xf32>
    %27 = vector.shape_cast %26 : vector<256x1xf32> to vector<16x16x1xf32>
    %c0_12 = arith.constant 0 : index
    %c0_13 = arith.constant 0 : index
    %c0_14 = arith.constant 0 : index
    %c0_15 = arith.constant 0 : index
    %c0_16 = arith.constant 0 : index
    %28 = vector.load %arg5[%c0_12, %c0_13, %c0_14, %c0_15, %c0_16] : memref<1x1x16x16x1xf32, #tpu.memory_space<vmem>>, vector<1x1x16x16x1xf32>
    %29 = vector.shape_cast %28 : vector<1x1x16x16x1xf32> to vector<16x16x1xf32>
    %30 = vector.shape_cast %27 : vector<16x16x1xf32> to vector<1x1x16x16x1xf32>
    tpu.vector_store %arg5[%c0_12, %c0_13, %c0_14, %c0_15, %c0_16], %30 {strides = array<i32>} : memref<1x1x16x16x1xf32, #tpu.memory_space<vmem>>, vector<1x1x16x16x1xf32>,
    return
  }
  func.func @transform_0(%arg0: i32, %arg1: i32) -> (i32, i32, i32, i32, i32) {
    %c0_i32 = arith.constant 0 : i32
    %c0_i32_0 = arith.constant 0 : i32
    %c0_i32_1 = arith.constant 0 : i32
    %c0_i32_2 = arith.constant 0 : i32
    return %arg0, %arg1, %c0_i32, %c0_i32_0, %c0_i32_1 : i32, i32, i32, i32, i32
  }
  func.func @transform_1(%arg0: i32, %arg1: i32) -> (i32, i32) {
    %c0_i32 = arith.constant 0 : i32
    %c0_i32_0 = arith.constant 0 : i32
    %c0_i32_1 = arith.constant 0 : i32
    return %c0_i32, %c0_i32_0 : i32, i32
  }
  func.func @transform_2(%arg0: i32, %arg1: i32) -> (i32, i32) {
    %c0_i32 = arith.constant 0 : i32
    %c0_i32_0 = arith.constant 0 : i32
    %c0_i32_1 = arith.constant 0 : i32
    return %c0_i32, %c0_i32_0 : i32, i32
  }
  func.func @transform_3(%arg0: i32, %arg1: i32) -> (i32, i32, i32, i32, i32) {
    %c0_i32 = arith.constant 0 : i32
    %c0_i32_0 = arith.constant 0 : i32
    %c0_i32_1 = arith.constant 0 : i32
    %c0_i32_2 = arith.constant 0 : i32
    return %arg0, %arg1, %c0_i32, %c0_i32_0, %c0_i32_1 : i32, i32, i32, i32, i32
  }
}

</mosaic_0001>

<bundles_post_ra>
// kernel: tile.23
= control target key start
LH: loop header
LB: loop body
LE: loop exit
PB: predicated region body
PF: predicated region fallthrough
CT: control target
= control target key end

     0   :  { %s22_s0 = inlined_call_operand.vmem [shape: f32[32], index: 0, kind: input, shape index: {}]   ;;  %s23_s1 = inlined_call_operand.vmem [shape: f32[4,32], index: 1, kind: output, shape index: {}]  }
   0x1   :  { %v4_v0 = vld [vmem:[%s22_s0] ss:$0 sm:$0xff] }
   0x2   :  { %5 = vst [vmem:[%s23_s1] sm:$0xf] %v4_v0 }

// kernel: tile.24
= control target key start
LH: loop header
LB: loop body
LE: loop exit
PB: predicated region body
PF: predicated region fallthrough
CT: control target
= control target key end

     0   :  { %s37_s8 = smov 32   ;;  %s38_s9 = smov 64   ;;  %vm7_vm0 = vcmask 261120   ;;  %vm13_vm1 = vcmask 1048320   ;;  %vm19_vm2 = vcmask 785920   ;;  %vm25_vm3 = vcmask 523520   ;;  %s55_s0 = inlined_call_operand.vmem [shape: f32[4,32], index: 0, kind: input, shape index: {}]   ;;  %s56_s1 = inlined_call_operand.vmem [shape: f32[1,128], index: 1, kind: output, shape index: {}]  }
   0x1   :  { %v4_v0 = vld [vmem:[%s55_s0] sm:$0xf]  ;;  %s36_s0 = smov 96  }
   0x2   :  { %5 = vst [vmem:[#allocation1] sm:$0xf] %v4_v0 }
   0x9   :  { %v10_v1 = vld [vmem:[#allocation1 + $0x3] sm:$0x1]   ;;  %v22_v2 = vld [vmem:[#allocation1 + $0x1] sm:$0x1]   ;;  %v16_v3 = vld [vmem:[#allocation1 + $0x2] sm:$0x1]  }
   0xa   :  { %11 = vrot.lane.b32.xlu0 %v10_v1, %s36_s0  ;;  %23 = vrot.lane.b32.xlu1 %v22_v2, %s37_s8  ;;  %v6_v4 = vld [vmem:[#allocation1] sm:$0x1]  }
   0xb   :  { %8 = vst.msk [vmem:[#allocation0] sm:$0x1] %vm7_vm0, %v6_v4  }
  0x12   :  { %17 = vrot.lane.b32.xlu0 %v16_v3, %s38_s9 }
  0x7c   :  { %v12_v5 = vpop.permute.xlu0 %11   ;;  %v24_v6 = vpop.permute.xlu1 %23  }
  0x7d   :  { %14 = vst.msk [vmem:[#allocation0] sm:$0x1] %vm13_vm1, %v12_v5  }
  0x84   :  { %v18_v7 = vpop.permute.xlu0 %17  }
  0x85   :  { %20 = vst.msk [vmem:[#allocation0] sm:$0x1] %vm19_vm2, %v18_v7  }
  0x86   :  { %26 = vst.msk [vmem:[#allocation0] sm:$0x1] %vm25_vm3, %v24_v6  }
  0x8d   :  { %v29_v8 = vld [vmem:[#allocation0] sm:$0x1] }
  0x8e   :  { %32 = vst [vmem:[%s56_s1] sm:$0x1] %v29_v8 }

// kernel: tile.29
= control target key start
LH: loop header
LB: loop body
LE: loop exit
PB: predicated region body
PF: predicated region fallthrough
CT: control target
= control target key end

     0   :  { %s37_s8 = smov 16   ;;  %s38_s9 = smov 32   ;;  %vm7_vm0 = vcmask 130048   ;;  %vm13_vm1 = vcmask 523648   ;;  %vm19_vm2 = vcmask 392448   ;;  %vm25_vm3 = vcmask 261248   ;;  %s55_s0 = inlined_call_operand.vmem [shape: f32[4,16], index: 0, kind: input, shape index: {}]   ;;  %s56_s1 = inlined_call_operand.vmem [shape: f32[1,64], index: 1, kind: output, shape index: {}]  }
   0x1   :  { %v4_v0 = vld [vmem:[%s55_s0] sm:$0xf]  ;;  %s36_s0 = smov 48  }
   0x2   :  { %5 = vst [vmem:[#allocation1] sm:$0xf] %v4_v0 }
   0x9   :  { %v10_v1 = vld [vmem:[#allocation1 + $0x3] sm:$0x1]   ;;  %v22_v2 = vld [vmem:[#allocation1 + $0x1] sm:$0x1]   ;;  %v16_v3 = vld [vmem:[#allocation1 + $0x2] sm:$0x1]  }
   0xa   :  { %11 = vrot.lane.b32.xlu0 %v10_v1, %s36_s0  ;;  %23 = vrot.lane.b32.xlu1 %v22_v2, %s37_s8  ;;  %v6_v4 = vld [vmem:[#allocation1] sm:$0x1]  }
   0xb   :  { %8 = vst.msk [vmem:[#allocation0] sm:$0x1] %vm7_vm0, %v6_v4  }
  0x12   :  { %17 = vrot.lane.b32.xlu0 %v16_v3, %s38_s9 }
  0x7c   :  { %v12_v5 = vpop.permute.xlu0 %11   ;;  %v24_v6 = vpop.permute.xlu1 %23  }
  0x7d   :  { %14 = vst.msk [vmem:[#allocation0] sm:$0x1] %vm13_vm1, %v12_v5  }
  0x84   :  { %v18_v7 = vpop.permute.xlu0 %17  }
  0x85   :  { %20 = vst.msk [vmem:[#allocation0] sm:$0x1] %vm19_vm2, %v18_v7  }
  0x86   :  { %26 = vst.msk [vmem:[#allocation0] sm:$0x1] %vm25_vm3, %v24_v6  }
  0x8d   :  { %v29_v8 = vld [vmem:[#allocation0] sm:$0x1] }
  0x8e   :  { %32 = vst [vmem:[%s56_s1] sm:$0x1] %v29_v8 }

// kernel: tile.28
= control target key start
LH: loop header
LB: loop body
LE: loop exit
PB: predicated region body
PF: predicated region fallthrough
CT: control target
= control target key end

     0   :  { %s22_s0 = inlined_call_operand.vmem [shape: f32[16], index: 0, kind: input, shape index: {}]   ;;  %s23_s1 = inlined_call_operand.vmem [shape: f32[4,16], index: 1, kind: output, shape index: {}]  }
   0x1   :  { %v4_v0 = vld [vmem:[%s22_s0] ss:$0 sm:$0xff] }
   0x2   :  { %5 = vst [vmem:[%s23_s1] sm:$0xf] %v4_v0 }

// kernel: tile.33
= control target key start
LH: loop header
LB: loop body
LE: loop exit
PB: predicated region body
PF: predicated region fallthrough
CT: control target
= control target key end

     0   :  { %s22_s0 = inlined_call_operand.vmem [shape: f32[8], index: 0, kind: input, shape index: {}]   ;;  %s23_s1 = inlined_call_operand.vmem [shape: f32[4,8], index: 1, kind: output, shape index: {}]  }
   0x1   :  { %v4_v0 = vld [vmem:[%s22_s0] ss:$0 sm:$0xff] }
   0x2   :  { %5 = vst [vmem:[%s23_s1] sm:$0xf] %v4_v0 }

// kernel: tile.34
= control target key start
LH: loop header
LB: loop body
LE: loop exit
PB: predicated region body
PF: predicated region fallthrough
CT: control target
= control target key end

     0   :  { %s37_s8 = smov 8   ;;  %s38_s9 = smov 16   ;;  %vm7_vm0 = vcmask 64512   ;;  %vm13_vm1 = vcmask 261312   ;;  %vm19_vm2 = vcmask 195712   ;;  %vm25_vm3 = vcmask 130112   ;;  %s55_s0 = inlined_call_operand.vmem [shape: f32[4,8], index: 0, kind: input, shape index: {}]   ;;  %s56_s1 = inlined_call_operand.vmem [shape: f32[1,32], index: 1, kind: output, shape index: {}]  }
   0x1   :  { %v4_v0 = vld [vmem:[%s55_s0] sm:$0xf]  ;;  %s36_s0 = smov 24  }
   0x2   :  { %5 = vst [vmem:[#allocation1] sm:$0xf] %v4_v0 }
   0x9   :  { %v10_v1 = vld [vmem:[#allocation1 + $0x3] sm:$0x1]   ;;  %v22_v2 = vld [vmem:[#allocation1 + $0x1] sm:$0x1]   ;;  %v16_v3 = vld [vmem:[#allocation1 + $0x2] sm:$0x1]  }
   0xa   :  { %11 = vrot.lane.b32.xlu0 %v10_v1, %s36_s0  ;;  %23 = vrot.lane.b32.xlu1 %v22_v2, %s37_s8  ;;  %v6_v4 = vld [vmem:[#allocation1] sm:$0x1]  }
   0xb   :  { %8 = vst.msk [vmem:[#allocation0] sm:$0x1] %vm7_vm0, %v6_v4  }
  0x12   :  { %17 = vrot.lane.b32.xlu0 %v16_v3, %s38_s9 }
  0x7c   :  { %v12_v5 = vpop.permute.xlu0 %11   ;;  %v24_v6 = vpop.permute.xlu1 %23  }
  0x7d   :  { %14 = vst.msk [vmem:[#allocation0] sm:$0x1] %vm13_vm1, %v12_v5  }
  0x84   :  { %v18_v7 = vpop.permute.xlu0 %17  }
  0x85   :  { %20 = vst.msk [vmem:[#allocation0] sm:$0x1] %vm19_vm2, %v18_v7  }
  0x86   :  { %26 = vst.msk [vmem:[#allocation0] sm:$0x1] %vm25_vm3, %v24_v6  }
  0x8d   :  { %v29_v8 = vld [vmem:[#allocation0] sm:$0x1] }
  0x8e   :  { %32 = vst [vmem:[%s56_s1] sm:$0x1] %v29_v8 }

// kernel: tile.38
= control target key start
LH: loop header
LB: loop body
LE: loop exit
PB: predicated region body
PF: predicated region fallthrough
CT: control target
= control target key end

     0   :  { %s22_s0 = inlined_call_operand.vmem [shape: f32[4], index: 0, kind: input, shape index: {}]   ;;  %s23_s1 = inlined_call_operand.vmem [shape: f32[4,4], index: 1, kind: output, shape index: {}]  }
   0x1   :  { %v4_v0 = vld [vmem:[%s22_s0] ss:$0 sm:$0xff] }
   0x2   :  { %5 = vst [vmem:[%s23_s1] sm:$0xf] %v4_v0 }

// kernel: tile.39
= control target key start
LH: loop header
LB: loop body
LE: loop exit
PB: predicated region body
PF: predicated region fallthrough
CT: control target
= control target key end

     0   :  { %s37_s8 = smov 4   ;;  %s38_s9 = smov 8   ;;  %vm7_vm0 = vcmask 31744   ;;  %vm13_vm1 = vcmask 130144   ;;  %vm19_vm2 = vcmask 97344   ;;  %vm25_vm3 = vcmask 64544   ;;  %s55_s0 = inlined_call_operand.vmem [shape: f32[4,4], index: 0, kind: input, shape index: {}]   ;;  %s56_s1 = inlined_call_operand.vmem [shape: f32[1,16], index: 1, kind: output, shape index: {}]  }
   0x1   :  { %v4_v0 = vld [vmem:[%s55_s0] sm:$0xf]  ;;  %s36_s0 = smov 12  }
   0x2   :  { %5 = vst [vmem:[#allocation1] sm:$0xf] %v4_v0 }
   0x9   :  { %v10_v1 = vld [vmem:[#allocation1 + $0x3] sm:$0x1]   ;;  %v22_v2 = vld [vmem:[#allocation1 + $0x1] sm:$0x1]   ;;  %v16_v3 = vld [vmem:[#allocation1 + $0x2] sm:$0x1]  }
   0xa   :  { %11 = vrot.lane.b32.xlu0 %v10_v1, %s36_s0  ;;  %23 = vrot.lane.b32.xlu1 %v22_v2, %s37_s8  ;;  %v6_v4 = vld [vmem:[#allocation1] sm:$0x1]  }
   0xb   :  { %8 = vst.msk [vmem:[#allocation0] sm:$0x1] %vm7_vm0, %v6_v4  }
  0x12   :  { %17 = vrot.lane.b32.xlu0 %v16_v3, %s38_s9 }
  0x7c   :  { %v12_v5 = vpop.permute.xlu0 %11   ;;  %v24_v6 = vpop.permute.xlu1 %23  }
  0x7d   :  { %14 = vst.msk [vmem:[#allocation0] sm:$0x1] %vm13_vm1, %v12_v5  }
  0x84   :  { %v18_v7 = vpop.permute.xlu0 %17  }
  0x85   :  { %20 = vst.msk [vmem:[#allocation0] sm:$0x1] %vm19_vm2, %v18_v7  }
  0x86   :  { %26 = vst.msk [vmem:[#allocation0] sm:$0x1] %vm25_vm3, %v24_v6  }
  0x8d   :  { %v29_v8 = vld [vmem:[#allocation0] sm:$0x1] }
  0x8e   :  { %32 = vst [vmem:[%s56_s1] sm:$0x1] %v29_v8 }

</bundles_post_ra>
